<compile_context>
chip_gen: v6e
topology: v6e:2x2x1
jax: 0.10.0
libtpu: 0.0.40
codegen_flags: <defaults>
</compile_context>

<pallas_src>
import jax
import jax.numpy as jnp
from jax.experimental import pallas as pl
from jax.experimental.pallas import tpu as pltpu

_EPS = 1e-5   # PyTorch BatchNorm1d default eps
_C = 128      # lane-padded channel width (real widths: hidden=64, classes=3)


def resnet1d_kernel(col1_ref, w1_ref, w2_ref, w3_ref, wf_ref, p_ref,
                    o_ref, hp2_ref, hp3_ref):
    """Fused ResNet1D forward.

    col1_ref : (B*L1, 128)        block-1 im2col LHS (K1*Cin=32 live columns)
    w1_ref   : (128, 128)         block-1 im2col weight (32x64 live)
    w2_ref   : (K2, 128, 128)     block-2 per-tap weights (64x64 live per tap)
    w3_ref   : (K3, 128, 128)     block-3 per-tap weights
    wf_ref   : (128, 128)         linear weight (64 x num_classes live)
    p_ref    : (8, 128)           rows: g1, be1, g2, be2, g3, be3, bf, 0
    o_ref    : (B, 128)           logits (classes zero-padded; wrapper slices)
    hp2_ref  : (B, L1+2*p2, 128)  zero-padded activation slab  (VMEM scratch)
    hp3_ref  : (B, L2+2*p3, 128)  zero-padded activation slab  (VMEM scratch)
    """
    B, C = o_ref.shape
    L1 = col1_ref.shape[0] // B

    g1, be1 = p_ref[0:1, :], p_ref[1:2, :]
    g2, be2 = p_ref[2:3, :], p_ref[3:4, :]
    g3, be3 = p_ref[4:5, :], p_ref[5:6, :]
    bf = p_ref[6:7, :]

    def bn_relu(accs, n_rows, g, beta):
        # BatchNorm1d, training mode: per-channel batch stats over (batch,
        # length), biased variance, eps=1e-5 -- computed across the list of
        # per-batch (rows, 128) accumulators.  ReLU fused.
        inv_n = 1.0 / float(n_rows)
        s = accs[0].sum(axis=0, keepdims=True)
        for a in accs[1:]:
            s = s + a.sum(axis=0, keepdims=True)
        mean = s * inv_n
        ds = [a - mean for a in accs]
        v = (ds[0] * ds[0]).sum(axis=0, keepdims=True)
        for d in ds[1:]:
            v = v + (d * d).sum(axis=0, keepdims=True)
        scale = jax.lax.rsqrt(v * inv_n + _EPS) * g
        return [jnp.maximum(d * scale + beta, 0.0) for d in ds]

    def store_padded(hp_ref, ys, lin):
        # Write per-batch block outputs into the next conv's padded slab,
        # zeroing ONLY the padding rows (interior is fully overwritten).
        lpad = hp_ref.shape[1]
        pad = (lpad - lin) // 2
        for b in range(B):
            hp_ref[b, 0:pad, :] = jnp.zeros((pad, C), jnp.float32)
            hp_ref[b, pad + lin:lpad, :] = jnp.zeros(
                (lpad - pad - lin, C), jnp.float32)
            hp_ref[b, pad:pad + lin, :] = ys[b]

    def conv_taps(hp_ref, w_ref):
        # Conv1d as K accumulating MXU matmuls straight off the padded slab
        # (no materialized im2col, no store amplification).  Conv bias is
        # omitted entirely: it cancels in the BN mean subtraction.
        k_taps = w_ref.shape[0]
        lout = hp_ref.shape[1] - k_taps + 1
        accs = []
        for b in range(B):
            acc = jnp.dot(hp_ref[b, 0:lout, :], w_ref[0],
                          preferred_element_type=jnp.float32)
            for k in range(1, k_taps):
                acc = acc + jnp.dot(hp_ref[b, k:k + lout, :], w_ref[k],
                                    preferred_element_type=jnp.float32)
            accs.append(acc)
        return accs, lout

    # ---- block 1: Conv1d(K=8, pad=4) + BN + ReLU  (ONE lane-dense matmul) ---
    acc1 = jnp.dot(col1_ref[...], w1_ref[...],
                   preferred_element_type=jnp.float32)
    y1 = bn_relu([acc1], B * L1, g1, be1)[0]
    store_padded(hp2_ref, [y1[b * L1:(b + 1) * L1, :] for b in range(B)], L1)

    # ---- block 2: Conv1d(K=5, pad=2) + BN + ReLU -----------------------------
    accs2, L2 = conv_taps(hp2_ref, w2_ref)
    ys2 = bn_relu(accs2, B * L2, g2, be2)
    store_padded(hp3_ref, ys2, L2)

    # ---- block 3: Conv1d(K=3, pad=1) + BN + ReLU -----------------------------
    accs3, L3 = conv_taps(hp3_ref, w3_ref)
    ys3 = bn_relu(accs3, B * L3, g3, be3)

    # ---- head: AdaptiveAvgPool1d(1) (per-batch row mean) + Linear ------------
    inv_l = 1.0 / float(L3)
    pooled = jnp.concatenate([y.sum(axis=0, keepdims=True) for y in ys3],
                             axis=0) * inv_l
    o_ref[...] = jnp.dot(pooled, wf_ref[...],
                         preferred_element_type=jnp.float32) + bf


# ----------------------------- wrapper ---------------------------------------

def _pad2d(a, rows, cols):
    return jnp.pad(a, ((0, rows - a.shape[0]), (0, cols - a.shape[1])))


def _prep_tap_weights(w_oik):
    # torch Conv1d (Cout, Cin, K) -> (K, 128, 128) per-tap matrices, channel
    # axes zero-padded so padded lanes contribute nothing.
    cout, cin, k = w_oik.shape
    w = jnp.transpose(w_oik.astype(jnp.float32), (2, 1, 0))       # (K, Cin, Cout)
    return jnp.pad(w, ((0, 0), (0, _C - cin), (0, _C - cout)))


def _prep_im2col_weight(w_oik):
    # torch Conv1d (Cout, Cin, K) -> (K*Cin, Cout) im2col weight, padded to
    # (128, 128).  Requires K*Cin <= 128 (holds: 8*4=32 for block 1).
    cout, cin, k = w_oik.shape
    w = jnp.transpose(w_oik.astype(jnp.float32), (2, 1, 0)).reshape(k * cin, cout)
    return _pad2d(w, _C, _C)


def _row(v):
    return jnp.pad(v.astype(jnp.float32), (0, _C - v.shape[0]))


@jax.jit
def resnet1d_forward(x_ncl, params):
    B, cin, L = x_ncl.shape
    num_classes = params["wf"].shape[0]
    k1, k2, k3 = params["w1"].shape[2], params["w2"].shape[2], params["w3"].shape[2]
    p1, p2, p3 = 4, 2, 1
    L1 = L + 2 * p1 - k1 + 1
    L2 = L1 + 2 * p2 - k2 + 1
    L3 = L2 + 2 * p3 - k3 + 1

    # Block-1 im2col built outside the kernel (pure layout plumbing on the
    # input): the contraction carries K1*Cin = 32 live columns instead of 1024.
    x = x_ncl.astype(jnp.float32)
    xp = jnp.pad(x, ((0, 0), (0, 0), (p1, p1)))                        # (B,Cin,L+2p1)
    idx = jnp.arange(L1)[:, None] + jnp.arange(k1)[None, :]            # (L1,K1)
    col = xp[:, :, idx]                                                # (B,Cin,L1,K1)
    col = jnp.transpose(col, (0, 2, 3, 1)).reshape(B * L1, k1 * cin)   # (B*L1,K1*Cin)
    col1 = _pad2d(col, B * L1, _C)

    w1 = _prep_im2col_weight(params["w1"])
    w2 = _prep_tap_weights(params["w2"])
    w3 = _prep_tap_weights(params["w3"])
    wf = _pad2d(jnp.transpose(params["wf"].astype(jnp.float32)), _C, _C)

    # All tiny per-channel vectors packed into ONE (8, 128) input.
    pvec = jnp.stack([_row(params["g1"]), _row(params["be1"]),
                      _row(params["g2"]), _row(params["be2"]),
                      _row(params["g3"]), _row(params["be3"]),
                      _row(params["bf"]), jnp.zeros((_C,), jnp.float32)])

    vmem = pl.BlockSpec(memory_space=pltpu.MemorySpace.VMEM)
    logits_padded = pl.pallas_call(
        resnet1d_kernel,
        out_shape=jax.ShapeDtypeStruct((B, _C), jnp.float32),
        in_specs=[vmem] * 6,
        out_specs=vmem,
        scratch_shapes=[
            pltpu.VMEM((B, L1 + 2 * p2, _C), jnp.float32),   # hp2 padded slab
            pltpu.VMEM((B, L2 + 2 * p3, _C), jnp.float32),   # hp3 padded slab
        ],
    )(col1, w1, w2, w3, wf, pvec)

    return logits_padded[:, :num_classes]


# ----------------------- pure-JAX reference ----------------------------------

def _ref_forward(x_ncl, params):
    """Independent math path (lax.conv, biases included) for correctness."""
    def block(h, w, b, g, beta, pad):
        y = jax.lax.conv_general_dilated(
            h, w, window_strides=(1,), padding=[(pad, pad)],
            dimension_numbers=("NCH", "OIH", "NCH"))
        y = y + b[None, :, None]
        mean = y.mean(axis=(0, 2), keepdims=True)
        var = ((y - mean) ** 2).mean(axis=(0, 2), keepdims=True)
        y = (y - mean) / jnp.sqrt(var + _EPS) * g[None, :, None] + beta[None, :, None]
        return jnp.maximum(y, 0.0)

    h = x_ncl.astype(jnp.float32)
    h = block(h, params["w1"], params["b1"], params["g1"], params["be1"], 4)
    h = block(h, params["w2"], params["b2"], params["g2"], params["be2"], 2)
    h = block(h, params["w3"], params["b3"], params["g3"], params["be3"], 1)
    pooled = h.mean(axis=2)
    return pooled @ params["wf"].T + params["bf"]


if __name__ == "__main__":
    key = jax.random.PRNGKey(0)
    B, Cin, L, num_classes = 2, 4, 16, 3

    ks = jax.random.split(key, 9)
    params = {
        # Conv1d weights in PyTorch layout (Cout, Cin, K); biases (Cout,).
        # (b1/b2/b3 feed only the reference: they cancel under training-mode
        #  BatchNorm, so the kernel never consumes them.)
        "w1": jax.random.normal(ks[0], (64, Cin, 8), jnp.float32) / jnp.sqrt(Cin * 8.0),
        "b1": jax.random.normal(ks[1], (64,), jnp.float32) * 0.1,
        "g1": jnp.ones((64,), jnp.float32),
        "be1": jnp.zeros((64,), jnp.float32),
        "w2": jax.random.normal(ks[2], (64, 64, 5), jnp.float32) / jnp.sqrt(64 * 5.0),
        "b2": jax.random.normal(ks[3], (64,), jnp.float32) * 0.1,
        "g2": jnp.ones((64,), jnp.float32),
        "be2": jnp.zeros((64,), jnp.float32),
        "w3": jax.random.normal(ks[4], (64, 64, 3), jnp.float32) / jnp.sqrt(64 * 3.0),
        "b3": jax.random.normal(ks[5], (64,), jnp.float32) * 0.1,
        "g3": jnp.ones((64,), jnp.float32),
        "be3": jnp.zeros((64,), jnp.float32),
        # Linear in PyTorch layout (num_classes, 64); bias (num_classes,)
        "wf": jax.random.normal(ks[6], (num_classes, 64), jnp.float32) / jnp.sqrt(64.0),
        "bf": jax.random.normal(ks[7], (num_classes,), jnp.float32) * 0.1,
    }

    x = jax.random.normal(ks[8], (B, Cin, L), jnp.float32)   # PyTorch NCL input

    out = jax.block_until_ready(resnet1d_forward(x, params))
    ref = jax.block_until_ready(_ref_forward(x, params))

    assert out.shape == (B, num_classes), out.shape
    assert jnp.allclose(out, ref, atol=1e-4, rtol=1e-4), (out, ref)
    print("KERNEL_OK")
</pallas_src>

<mosaic_0001>
module attributes {stable_mosaic.version = 11 : i64} {
  func.func @resnet1d_kernel(%arg0: memref<34x128xf32, #tpu.memory_space<vmem>>, %arg1: memref<128x128xf32, #tpu.memory_space<vmem>>, %arg2: memref<5x128x128xf32, #tpu.memory_space<vmem>>, %arg3: memref<3x128x128xf32, #tpu.memory_space<vmem>>, %arg4: memref<128x128xf32, #tpu.memory_space<vmem>>, %arg5: memref<8x128xf32, #tpu.memory_space<vmem>>, %arg6: memref<2x128xf32, #tpu.memory_space<vmem>>, %arg7: memref<2x21x128xf32, #tpu.memory_space<vmem>>, %arg8: memref<2x19x128xf32, #tpu.memory_space<vmem>>) attributes {dimension_semantics = [], scalar_prefetch = 0 : i64, scratch_operands = 2 : i64, tpu.core_type = #tpu.core_type<tc>} {
    %c0 = arith.constant 0 : index
    %c0_0 = arith.constant 0 : index
    %0 = vector.load %arg5[%c0, %c0_0] : memref<8x128xf32, #tpu.memory_space<vmem>>, vector<1x128xf32>
    %c1 = arith.constant 1 : index
    %c0_1 = arith.constant 0 : index
    %1 = vector.load %arg5[%c1, %c0_1] : memref<8x128xf32, #tpu.memory_space<vmem>>, vector<1x128xf32>
    %c2 = arith.constant 2 : index
    %c0_2 = arith.constant 0 : index
    %2 = vector.load %arg5[%c2, %c0_2] : memref<8x128xf32, #tpu.memory_space<vmem>>, vector<1x128xf32>
    %c3 = arith.constant 3 : index
    %c0_3 = arith.constant 0 : index
    %3 = vector.load %arg5[%c3, %c0_3] : memref<8x128xf32, #tpu.memory_space<vmem>>, vector<1x128xf32>
    %c4 = arith.constant 4 : index
    %c0_4 = arith.constant 0 : index
    %4 = vector.load %arg5[%c4, %c0_4] : memref<8x128xf32, #tpu.memory_space<vmem>>, vector<1x128xf32>
    %c5 = arith.constant 5 : index
    %c0_5 = arith.constant 0 : index
    %5 = vector.load %arg5[%c5, %c0_5] : memref<8x128xf32, #tpu.memory_space<vmem>>, vector<1x128xf32>
    %c6 = arith.constant 6 : index
    %c0_6 = arith.constant 0 : index
    %6 = vector.load %arg5[%c6, %c0_6] : memref<8x128xf32, #tpu.memory_space<vmem>>, vector<1x128xf32>
    %c0_7 = arith.constant 0 : index
    %c0_8 = arith.constant 0 : index
    %7 = vector.load %arg0[%c0_7, %c0_8] : memref<34x128xf32, #tpu.memory_space<vmem>>, vector<34x128xf32>
    %c0_9 = arith.constant 0 : index
    %c0_10 = arith.constant 0 : index
    %8 = vector.load %arg1[%c0_9, %c0_10] : memref<128x128xf32, #tpu.memory_space<vmem>>, vector<128x128xf32>
    %cst = arith.constant dense<0.000000e+00> : vector<34x128xf32>
    %9 = tpu.matmul %7, %8, %cst {dimension_numbers = #tpu.dot_dimension_numbers<[1], [0], [0], [1], [0, 0, 1, 1], [], []>} : vector<34x128xf32>, vector<128x128xf32>, vector<34x128xf32> -> vector<34x128xf32>
    %cst_11 = arith.constant dense<0.000000e+00> : vector<128xf32>
    %10 = vector.multi_reduction <add>, %9, %cst_11 [0] : vector<34x128xf32> to vector<128xf32>
    %11 = vector.shape_cast %10 : vector<128xf32> to vector<1x128xf32>
    %cst_12 = arith.constant 0.0294117648 : f32
    %12 = vector.broadcast %cst_12 : f32 to vector<1x128xf32>
    %13 = arith.mulf %11, %12 : vector<1x128xf32>
    %14 = vector.broadcast %13 : vector<1x128xf32> to vector<34x128xf32>
    %15 = arith.subf %9, %14 : vector<34x128xf32>
    %16 = arith.mulf %15, %15 : vector<34x128xf32>
    %cst_13 = arith.constant dense<0.000000e+00> : vector<128xf32>
    %17 = vector.multi_reduction <add>, %16, %cst_13 [0] : vector<34x128xf32> to vector<128xf32>
    %18 = vector.shape_cast %17 : vector<128xf32> to vector<1x128xf32>
    %cst_14 = arith.constant 0.0294117648 : f32
    %19 = vector.broadcast %cst_14 : f32 to vector<1x128xf32>
    %20 = arith.mulf %18, %19 : vector<1x128xf32>
    %cst_15 = arith.constant 9.99999974E-6 : f32
    %21 = vector.broadcast %cst_15 : f32 to vector<1x128xf32>
    %22 = arith.addf %20, %21 : vector<1x128xf32>
    %23 = math.rsqrt %22 : vector<1x128xf32>
    %24 = arith.mulf %23, %0 : vector<1x128xf32>
    %25 = vector.broadcast %24 : vector<1x128xf32> to vector<34x128xf32>
    %26 = arith.mulf %15, %25 : vector<34x128xf32>
    %27 = vector.broadcast %1 : vector<1x128xf32> to vector<34x128xf32>
    %28 = arith.addf %26, %27 : vector<34x128xf32>
    %cst_16 = arith.constant 0.000000e+00 : f32
    %29 = vector.broadcast %cst_16 : f32 to vector<34x128xf32>
    %30 = arith.maximumf %28, %29 : vector<34x128xf32>
    %31 = vector.extract_strided_slice %30 {offsets = [0, 0], sizes = [17, 128], strides = [1, 1]} : vector<34x128xf32> to vector<17x128xf32>
    %32 = vector.extract_strided_slice %30 {offsets = [17, 0], sizes = [17, 128], strides = [1, 1]} : vector<34x128xf32> to vector<17x128xf32>
    %cst_17 = arith.constant 0.000000e+00 : f32
    %33 = vector.broadcast %cst_17 : f32 to vector<2x128xf32>
    %c0_18 = arith.constant 0 : index
    %c0_19 = arith.constant 0 : index
    %c0_20 = arith.constant 0 : index
    %34 = vector.load %arg7[%c0_18, %c0_19, %c0_20] : memref<2x21x128xf32, #tpu.memory_space<vmem>>, vector<1x2x128xf32>
    %35 = vector.shape_cast %34 : vector<1x2x128xf32> to vector<2x128xf32>
    %36 = vector.shape_cast %33 : vector<2x128xf32> to vector<1x2x128xf32>
    tpu.vector_store %arg7[%c0_18, %c0_19, %c0_20], %36 {strides = array<i32>} : memref<2x21x128xf32, #tpu.memory_space<vmem>>, vector<1x2x128xf32>,
    %cst_21 = arith.constant 0.000000e+00 : f32
    %37 = vector.broadcast %cst_21 : f32 to vector<2x128xf32>
    %c0_22 = arith.constant 0 : index
    %c19 = arith.constant 19 : index
    %c0_23 = arith.constant 0 : index
    %38 = vector.load %arg7[%c0_22, %c19, %c0_23] : memref<2x21x128xf32, #tpu.memory_space<vmem>>, vector<1x2x128xf32>
    %39 = vector.shape_cast %38 : vector<1x2x128xf32> to vector<2x128xf32>
    %40 = vector.shape_cast %37 : vector<2x128xf32> to vector<1x2x128xf32>
    tpu.vector_store %arg7[%c0_22, %c19, %c0_23], %40 {strides = array<i32>} : memref<2x21x128xf32, #tpu.memory_space<vmem>>, vector<1x2x128xf32>,
    %c0_24 = arith.constant 0 : index
    %c2_25 = arith.constant 2 : index
    %c0_26 = arith.constant 0 : index
    %41 = vector.load %arg7[%c0_24, %c2_25, %c0_26] : memref<2x21x128xf32, #tpu.memory_space<vmem>>, vector<1x17x128xf32>
    %42 = vector.shape_cast %41 : vector<1x17x128xf32> to vector<17x128xf32>
    %43 = vector.shape_cast %31 : vector<17x128xf32> to vector<1x17x128xf32>
    tpu.vector_store %arg7[%c0_24, %c2_25, %c0_26], %43 {strides = array<i32>} : memref<2x21x128xf32, #tpu.memory_space<vmem>>, vector<1x17x128xf32>,
    %cst_27 = arith.constant 0.000000e+00 : f32
    %44 = vector.broadcast %cst_27 : f32 to vector<2x128xf32>
    %c1_28 = arith.constant 1 : index
    %c0_29 = arith.constant 0 : index
    %c0_30 = arith.constant 0 : index
    %45 = vector.load %arg7[%c1_28, %c0_29, %c0_30] : memref<2x21x128xf32, #tpu.memory_space<vmem>>, vector<1x2x128xf32>
    %46 = vector.shape_cast %45 : vector<1x2x128xf32> to vector<2x128xf32>
    %47 = vector.shape_cast %44 : vector<2x128xf32> to vector<1x2x128xf32>
    tpu.vector_store %arg7[%c1_28, %c0_29, %c0_30], %47 {strides = array<i32>} : memref<2x21x128xf32, #tpu.memory_space<vmem>>, vector<1x2x128xf32>,
    %cst_31 = arith.constant 0.000000e+00 : f32
    %48 = vector.broadcast %cst_31 : f32 to vector<2x128xf32>
    %c1_32 = arith.constant 1 : index
    %c19_33 = arith.constant 19 : index
    %c0_34 = arith.constant 0 : index
    %49 = vector.load %arg7[%c1_32, %c19_33, %c0_34] : memref<2x21x128xf32, #tpu.memory_space<vmem>>, vector<1x2x128xf32>
    %50 = vector.shape_cast %49 : vector<1x2x128xf32> to vector<2x128xf32>
    %51 = vector.shape_cast %48 : vector<2x128xf32> to vector<1x2x128xf32>
    tpu.vector_store %arg7[%c1_32, %c19_33, %c0_34], %51 {strides = array<i32>} : memref<2x21x128xf32, #tpu.memory_space<vmem>>, vector<1x2x128xf32>,
    %c1_35 = arith.constant 1 : index
    %c2_36 = arith.constant 2 : index
    %c0_37 = arith.constant 0 : index
    %52 = vector.load %arg7[%c1_35, %c2_36, %c0_37] : memref<2x21x128xf32, #tpu.memory_space<vmem>>, vector<1x17x128xf32>
    %53 = vector.shape_cast %52 : vector<1x17x128xf32> to vector<17x128xf32>
    %54 = vector.shape_cast %32 : vector<17x128xf32> to vector<1x17x128xf32>
    tpu.vector_store %arg7[%c1_35, %c2_36, %c0_37], %54 {strides = array<i32>} : memref<2x21x128xf32, #tpu.memory_space<vmem>>, vector<1x17x128xf32>,
    %c0_38 = arith.constant 0 : index
    %c0_39 = arith.constant 0 : index
    %c0_40 = arith.constant 0 : index
    %55 = vector.load %arg7[%c0_38, %c0_39, %c0_40] : memref<2x21x128xf32, #tpu.memory_space<vmem>>, vector<1x17x128xf32>
    %56 = vector.shape_cast %55 : vector<1x17x128xf32> to vector<17x128xf32>
    %c0_41 = arith.constant 0 : index
    %c0_42 = arith.constant 0 : index
    %c0_43 = arith.constant 0 : index
    %57 = vector.load %arg2[%c0_41, %c0_42, %c0_43] : memref<5x128x128xf32, #tpu.memory_space<vmem>>, vector<1x128x128xf32>
    %58 = vector.shape_cast %57 : vector<1x128x128xf32> to vector<128x128xf32>
    %cst_44 = arith.constant dense<0.000000e+00> : vector<17x128xf32>
    %59 = tpu.matmul %56, %58, %cst_44 {dimension_numbers = #tpu.dot_dimension_numbers<[1], [0], [0], [1], [0, 0, 1, 1], [], []>} : vector<17x128xf32>, vector<128x128xf32>, vector<17x128xf32> -> vector<17x128xf32>
    %c0_45 = arith.constant 0 : index
    %c1_46 = arith.constant 1 : index
    %c0_47 = arith.constant 0 : index
    %60 = vector.load %arg7[%c0_45, %c1_46, %c0_47] : memref<2x21x128xf32, #tpu.memory_space<vmem>>, vector<1x17x128xf32>
    %61 = vector.shape_cast %60 : vector<1x17x128xf32> to vector<17x128xf32>
    %c1_48 = arith.constant 1 : index
    %c0_49 = arith.constant 0 : index
    %c0_50 = arith.constant 0 : index
    %62 = vector.load %arg2[%c1_48, %c0_49, %c0_50] : memref<5x128x128xf32, #tpu.memory_space<vmem>>, vector<1x128x128xf32>
    %63 = vector.shape_cast %62 : vector<1x128x128xf32> to vector<128x128xf32>
    %cst_51 = arith.constant dense<0.000000e+00> : vector<17x128xf32>
    %64 = tpu.matmul %61, %63, %cst_51 {dimension_numbers = #tpu.dot_dimension_numbers<[1], [0], [0], [1], [0, 0, 1, 1], [], []>} : vector<17x128xf32>, vector<128x128xf32>, vector<17x128xf32> -> vector<17x128xf32>
    %65 = arith.addf %59, %64 : vector<17x128xf32>
    %c0_52 = arith.constant 0 : index
    %c2_53 = arith.constant 2 : index
    %c0_54 = arith.constant 0 : index
    %66 = vector.load %arg7[%c0_52, %c2_53, %c0_54] : memref<2x21x128xf32, #tpu.memory_space<vmem>>, vector<1x17x128xf32>
    %67 = vector.shape_cast %66 : vector<1x17x128xf32> to vector<17x128xf32>
    %c2_55 = arith.constant 2 : index
    %c0_56 = arith.constant 0 : index
    %c0_57 = arith.constant 0 : index
    %68 = vector.load %arg2[%c2_55, %c0_56, %c0_57] : memref<5x128x128xf32, #tpu.memory_space<vmem>>, vector<1x128x128xf32>
    %69 = vector.shape_cast %68 : vector<1x128x128xf32> to vector<128x128xf32>
    %cst_58 = arith.constant dense<0.000000e+00> : vector<17x128xf32>
    %70 = tpu.matmul %67, %69, %cst_58 {dimension_numbers = #tpu.dot_dimension_numbers<[1], [0], [0], [1], [0, 0, 1, 1], [], []>} : vector<17x128xf32>, vector<128x128xf32>, vector<17x128xf32> -> vector<17x128xf32>
    %71 = arith.addf %65, %70 : vector<17x128xf32>
    %c0_59 = arith.constant 0 : index
    %c3_60 = arith.constant 3 : index
    %c0_61 = arith.constant 0 : index
    %72 = vector.load %arg7[%c0_59, %c3_60, %c0_61] : memref<2x21x128xf32, #tpu.memory_space<vmem>>, vector<1x17x128xf32>
    %73 = vector.shape_cast %72 : vector<1x17x128xf32> to vector<17x128xf32>
    %c3_62 = arith.constant 3 : index
    %c0_63 = arith.constant 0 : index
    %c0_64 = arith.constant 0 : index
    %74 = vector.load %arg2[%c3_62, %c0_63, %c0_64] : memref<5x128x128xf32, #tpu.memory_space<vmem>>, vector<1x128x128xf32>
    %75 = vector.shape_cast %74 : vector<1x128x128xf32> to vector<128x128xf32>
    %cst_65 = arith.constant dense<0.000000e+00> : vector<17x128xf32>
    %76 = tpu.matmul %73, %75, %cst_65 {dimension_numbers = #tpu.dot_dimension_numbers<[1], [0], [0], [1], [0, 0, 1, 1], [], []>} : vector<17x128xf32>, vector<128x128xf32>, vector<17x128xf32> -> vector<17x128xf32>
    %77 = arith.addf %71, %76 : vector<17x128xf32>
    %c0_66 = arith.constant 0 : index
    %c4_67 = arith.constant 4 : index
    %c0_68 = arith.constant 0 : index
    %78 = vector.load %arg7[%c0_66, %c4_67, %c0_68] : memref<2x21x128xf32, #tpu.memory_space<vmem>>, vector<1x17x128xf32>
    %79 = vector.shape_cast %78 : vector<1x17x128xf32> to vector<17x128xf32>
    %c4_69 = arith.constant 4 : index
    %c0_70 = arith.constant 0 : index
    %c0_71 = arith.constant 0 : index
    %80 = vector.load %arg2[%c4_69, %c0_70, %c0_71] : memref<5x128x128xf32, #tpu.memory_space<vmem>>, vector<1x128x128xf32>
    %81 = vector.shape_cast %80 : vector<1x128x128xf32> to vector<128x128xf32>
    %cst_72 = arith.constant dense<0.000000e+00> : vector<17x128xf32>
    %82 = tpu.matmul %79, %81, %cst_72 {dimension_numbers = #tpu.dot_dimension_numbers<[1], [0], [0], [1], [0, 0, 1, 1], [], []>} : vector<17x128xf32>, vector<128x128xf32>, vector<17x128xf32> -> vector<17x128xf32>
    %83 = arith.addf %77, %82 : vector<17x128xf32>
    %c1_73 = arith.constant 1 : index
    %c0_74 = arith.constant 0 : index
    %c0_75 = arith.constant 0 : index
    %84 = vector.load %arg7[%c1_73, %c0_74, %c0_75] : memref<2x21x128xf32, #tpu.memory_space<vmem>>, vector<1x17x128xf32>
    %85 = vector.shape_cast %84 : vector<1x17x128xf32> to vector<17x128xf32>
    %c0_76 = arith.constant 0 : index
    %c0_77 = arith.constant 0 : index
    %c0_78 = arith.constant 0 : index
    %86 = vector.load %arg2[%c0_76, %c0_77, %c0_78] : memref<5x128x128xf32, #tpu.memory_space<vmem>>, vector<1x128x128xf32>
    %87 = vector.shape_cast %86 : vector<1x128x128xf32> to vector<128x128xf32>
    %cst_79 = arith.constant dense<0.000000e+00> : vector<17x128xf32>
    %88 = tpu.matmul %85, %87, %cst_79 {dimension_numbers = #tpu.dot_dimension_numbers<[1], [0], [0], [1], [0, 0, 1, 1], [], []>} : vector<17x128xf32>, vector<128x128xf32>, vector<17x128xf32> -> vector<17x128xf32>
    %c1_80 = arith.constant 1 : index
    %c1_81 = arith.constant 1 : index
    %c0_82 = arith.constant 0 : index
    %89 = vector.load %arg7[%c1_80, %c1_81, %c0_82] : memref<2x21x128xf32, #tpu.memory_space<vmem>>, vector<1x17x128xf32>
    %90 = vector.shape_cast %89 : vector<1x17x128xf32> to vector<17x128xf32>
    %c1_83 = arith.constant 1 : index
    %c0_84 = arith.constant 0 : index
    %c0_85 = arith.constant 0 : index
    %91 = vector.load %arg2[%c1_83, %c0_84, %c0_85] : memref<5x128x128xf32, #tpu.memory_space<vmem>>, vector<1x128x128xf32>
    %92 = vector.shape_cast %91 : vector<1x128x128xf32> to vector<128x128xf32>
    %cst_86 = arith.constant dense<0.000000e+00> : vector<17x128xf32>
    %93 = tpu.matmul %90, %92, %cst_86 {dimension_numbers = #tpu.dot_dimension_numbers<[1], [0], [0], [1], [0, 0, 1, 1], [], []>} : vector<17x128xf32>, vector<128x128xf32>, vector<17x128xf32> -> vector<17x128xf32>
    %94 = arith.addf %88, %93 : vector<17x128xf32>
    %c1_87 = arith.constant 1 : index
    %c2_88 = arith.constant 2 : index
    %c0_89 = arith.constant 0 : index
    %95 = vector.load %arg7[%c1_87, %c2_88, %c0_89] : memref<2x21x128xf32, #tpu.memory_space<vmem>>, vector<1x17x128xf32>
    %96 = vector.shape_cast %95 : vector<1x17x128xf32> to vector<17x128xf32>
    %c2_90 = arith.constant 2 : index
    %c0_91 = arith.constant 0 : index
    %c0_92 = arith.constant 0 : index
    %97 = vector.load %arg2[%c2_90, %c0_91, %c0_92] : memref<5x128x128xf32, #tpu.memory_space<vmem>>, vector<1x128x128xf32>
    %98 = vector.shape_cast %97 : vector<1x128x128xf32> to vector<128x128xf32>
    %cst_93 = arith.constant dense<0.000000e+00> : vector<17x128xf32>
    %99 = tpu.matmul %96, %98, %cst_93 {dimension_numbers = #tpu.dot_dimension_numbers<[1], [0], [0], [1], [0, 0, 1, 1], [], []>} : vector<17x128xf32>, vector<128x128xf32>, vector<17x128xf32> -> vector<17x128xf32>
    %100 = arith.addf %94, %99 : vector<17x128xf32>
    %c1_94 = arith.constant 1 : index
    %c3_95 = arith.constant 3 : index
    %c0_96 = arith.constant 0 : index
    %101 = vector.load %arg7[%c1_94, %c3_95, %c0_96] : memref<2x21x128xf32, #tpu.memory_space<vmem>>, vector<1x17x128xf32>
    %102 = vector.shape_cast %101 : vector<1x17x128xf32> to vector<17x128xf32>
    %c3_97 = arith.constant 3 : index
    %c0_98 = arith.constant 0 : index
    %c0_99 = arith.constant 0 : index
    %103 = vector.load %arg2[%c3_97, %c0_98, %c0_99] : memref<5x128x128xf32, #tpu.memory_space<vmem>>, vector<1x128x128xf32>
    %104 = vector.shape_cast %103 : vector<1x128x128xf32> to vector<128x128xf32>
    %cst_100 = arith.constant dense<0.000000e+00> : vector<17x128xf32>
    %105 = tpu.matmul %102, %104, %cst_100 {dimension_numbers = #tpu.dot_dimension_numbers<[1], [0], [0], [1], [0, 0, 1, 1], [], []>} : vector<17x128xf32>, vector<128x128xf32>, vector<17x128xf32> -> vector<17x128xf32>
    %106 = arith.addf %100, %105 : vector<17x128xf32>
    %c1_101 = arith.constant 1 : index
    %c4_102 = arith.constant 4 : index
    %c0_103 = arith.constant 0 : index
    %107 = vector.load %arg7[%c1_101, %c4_102, %c0_103] : memref<2x21x128xf32, #tpu.memory_space<vmem>>, vector<1x17x128xf32>
    %108 = vector.shape_cast %107 : vector<1x17x128xf32> to vector<17x128xf32>
    %c4_104 = arith.constant 4 : index
    %c0_105 = arith.constant 0 : index
    %c0_106 = arith.constant 0 : index
    %109 = vector.load %arg2[%c4_104, %c0_105, %c0_106] : memref<5x128x128xf32, #tpu.memory_space<vmem>>, vector<1x128x128xf32>
    %110 = vector.shape_cast %109 : vector<1x128x128xf32> to vector<128x128xf32>
    %cst_107 = arith.constant dense<0.000000e+00> : vector<17x128xf32>
    %111 = tpu.matmul %108, %110, %cst_107 {dimension_numbers = #tpu.dot_dimension_numbers<[1], [0], [0], [1], [0, 0, 1, 1], [], []>} : vector<17x128xf32>, vector<128x128xf32>, vector<17x128xf32> -> vector<17x128xf32>
    %112 = arith.addf %106, %111 : vector<17x128xf32>
    %cst_108 = arith.constant dense<0.000000e+00> : vector<128xf32>
    %113 = vector.multi_reduction <add>, %83, %cst_108 [0] : vector<17x128xf32> to vector<128xf32>
    %114 = vector.shape_cast %113 : vector<128xf32> to vector<1x128xf32>
    %cst_109 = arith.constant dense<0.000000e+00> : vector<128xf32>
    %115 = vector.multi_reduction <add>, %112, %cst_109 [0] : vector<17x128xf32> to vector<128xf32>
    %116 = vector.shape_cast %115 : vector<128xf32> to vector<1x128xf32>
    %117 = arith.addf %114, %116 : vector<1x128xf32>
    %cst_110 = arith.constant 0.0294117648 : f32
    %118 = vector.broadcast %cst_110 : f32 to vector<1x128xf32>
    %119 = arith.mulf %117, %118 : vector<1x128xf32>
    %120 = vector.broadcast %119 : vector<1x128xf32> to vector<17x128xf32>
    %121 = arith.subf %83, %120 : vector<17x128xf32>
    %122 = vector.broadcast %119 : vector<1x128xf32> to vector<17x128xf32>
    %123 = arith.subf %112, %122 : vector<17x128xf32>
    %124 = arith.mulf %121, %121 : vector<17x128xf32>
    %cst_111 = arith.constant dense<0.000000e+00> : vector<128xf32>
    %125 = vector.multi_reduction <add>, %124, %cst_111 [0] : vector<17x128xf32> to vector<128xf32>
    %126 = vector.shape_cast %125 : vector<128xf32> to vector<1x128xf32>
    %127 = arith.mulf %123, %123 : vector<17x128xf32>
    %cst_112 = arith.constant dense<0.000000e+00> : vector<128xf32>
    %128 = vector.multi_reduction <add>, %127, %cst_112 [0] : vector<17x128xf32> to vector<128xf32>
    %129 = vector.shape_cast %128 : vector<128xf32> to vector<1x128xf32>
    %130 = arith.addf %126, %129 : vector<1x128xf32>
    %cst_113 = arith.constant 0.0294117648 : f32
    %131 = vector.broadcast %cst_113 : f32 to vector<1x128xf32>
    %132 = arith.mulf %130, %131 : vector<1x128xf32>
    %cst_114 = arith.constant 9.99999974E-6 : f32
    %133 = vector.broadcast %cst_114 : f32 to vector<1x128xf32>
    %134 = arith.addf %132, %133 : vector<1x128xf32>
    %135 = math.rsqrt %134 : vector<1x128xf32>
    %136 = arith.mulf %135, %2 : vector<1x128xf32>
    %137 = vector.broadcast %136 : vector<1x128xf32> to vector<17x128xf32>
    %138 = arith.mulf %121, %137 : vector<17x128xf32>
    %139 = vector.broadcast %3 : vector<1x128xf32> to vector<17x128xf32>
    %140 = arith.addf %138, %139 : vector<17x128xf32>
    %cst_115 = arith.constant 0.000000e+00 : f32
    %141 = vector.broadcast %cst_115 : f32 to vector<17x128xf32>
    %142 = arith.maximumf %140, %141 : vector<17x128xf32>
    %143 = vector.broadcast %136 : vector<1x128xf32> to vector<17x128xf32>
    %144 = arith.mulf %123, %143 : vector<17x128xf32>
    %145 = vector.broadcast %3 : vector<1x128xf32> to vector<17x128xf32>
    %146 = arith.addf %144, %145 : vector<17x128xf32>
    %cst_116 = arith.constant 0.000000e+00 : f32
    %147 = vector.broadcast %cst_116 : f32 to vector<17x128xf32>
    %148 = arith.maximumf %146, %147 : vector<17x128xf32>
    %cst_117 = arith.constant 0.000000e+00 : f32
    %149 = vector.broadcast %cst_117 : f32 to vector<1x128xf32>
    %c0_118 = arith.constant 0 : index
    %c0_119 = arith.constant 0 : index
    %c0_120 = arith.constant 0 : index
    %150 = vector.load %arg8[%c0_118, %c0_119, %c0_120] : memref<2x19x128xf32, #tpu.memory_space<vmem>>, vector<1x1x128xf32>
    %151 = vector.shape_cast %150 : vector<1x1x128xf32> to vector<1x128xf32>
    %152 = vector.shape_cast %149 : vector<1x128xf32> to vector<1x1x128xf32>
    tpu.vector_store %arg8[%c0_118, %c0_119, %c0_120], %152 {strides = array<i32>} : memref<2x19x128xf32, #tpu.memory_space<vmem>>, vector<1x1x128xf32>,
    %cst_121 = arith.constant 0.000000e+00 : f32
    %153 = vector.broadcast %cst_121 : f32 to vector<1x128xf32>
    %c0_122 = arith.constant 0 : index
    %c18 = arith.constant 18 : index
    %c0_123 = arith.constant 0 : index
    %154 = vector.load %arg8[%c0_122, %c18, %c0_123] : memref<2x19x128xf32, #tpu.memory_space<vmem>>, vector<1x1x128xf32>
    %155 = vector.shape_cast %154 : vector<1x1x128xf32> to vector<1x128xf32>
    %156 = vector.shape_cast %153 : vector<1x128xf32> to vector<1x1x128xf32>
    tpu.vector_store %arg8[%c0_122, %c18, %c0_123], %156 {strides = array<i32>} : memref<2x19x128xf32, #tpu.memory_space<vmem>>, vector<1x1x128xf32>,
    %c0_124 = arith.constant 0 : index
    %c1_125 = arith.constant 1 : index
    %c0_126 = arith.constant 0 : index
    %157 = vector.load %arg8[%c0_124, %c1_125, %c0_126] : memref<2x19x128xf32, #tpu.memory_space<vmem>>, vector<1x17x128xf32>
    %158 = vector.shape_cast %157 : vector<1x17x128xf32> to vector<17x128xf32>
    %159 = vector.shape_cast %142 : vector<17x128xf32> to vector<1x17x128xf32>
    tpu.vector_store %arg8[%c0_124, %c1_125, %c0_126], %159 {strides = array<i32>} : memref<2x19x128xf32, #tpu.memory_space<vmem>>, vector<1x17x128xf32>,
    %cst_127 = arith.constant 0.000000e+00 : f32
    %160 = vector.broadcast %cst_127 : f32 to vector<1x128xf32>
    %c1_128 = arith.constant 1 : index
    %c0_129 = arith.constant 0 : index
    %c0_130 = arith.constant 0 : index
    %161 = vector.load %arg8[%c1_128, %c0_129, %c0_130] : memref<2x19x128xf32, #tpu.memory_space<vmem>>, vector<1x1x128xf32>
    %162 = vector.shape_cast %161 : vector<1x1x128xf32> to vector<1x128xf32>
    %163 = vector.shape_cast %160 : vector<1x128xf32> to vector<1x1x128xf32>
    tpu.vector_store %arg8[%c1_128, %c0_129, %c0_130], %163 {strides = array<i32>} : memref<2x19x128xf32, #tpu.memory_space<vmem>>, vector<1x1x128xf32>,
    %cst_131 = arith.constant 0.000000e+00 : f32
    %164 = vector.broadcast %cst_131 : f32 to vector<1x128xf32>
    %c1_132 = arith.constant 1 : index
    %c18_133 = arith.constant 18 : index
    %c0_134 = arith.constant 0 : index
    %165 = vector.load %arg8[%c1_132, %c18_133, %c0_134] : memref<2x19x128xf32, #tpu.memory_space<vmem>>, vector<1x1x128xf32>
    %166 = vector.shape_cast %165 : vector<1x1x128xf32> to vector<1x128xf32>
    %167 = vector.shape_cast %164 : vector<1x128xf32> to vector<1x1x128xf32>
    tpu.vector_store %arg8[%c1_132, %c18_133, %c0_134], %167 {strides = array<i32>} : memref<2x19x128xf32, #tpu.memory_space<vmem>>, vector<1x1x128xf32>,
    %c1_135 = arith.constant 1 : index
    %c1_136 = arith.constant 1 : index
    %c0_137 = arith.constant 0 : index
    %168 = vector.load %arg8[%c1_135, %c1_136, %c0_137] : memref<2x19x128xf32, #tpu.memory_space<vmem>>, vector<1x17x128xf32>
    %169 = vector.shape_cast %168 : vector<1x17x128xf32> to vector<17x128xf32>
    %170 = vector.shape_cast %148 : vector<17x128xf32> to vector<1x17x128xf32>
    tpu.vector_store %arg8[%c1_135, %c1_136, %c0_137], %170 {strides = array<i32>} : memref<2x19x128xf32, #tpu.memory_space<vmem>>, vector<1x17x128xf32>,
    %c0_138 = arith.constant 0 : index
    %c0_139 = arith.constant 0 : index
    %c0_140 = arith.constant 0 : index
    %171 = vector.load %arg8[%c0_138, %c0_139, %c0_140] : memref<2x19x128xf32, #tpu.memory_space<vmem>>, vector<1x17x128xf32>
    %172 = vector.shape_cast %171 : vector<1x17x128xf32> to vector<17x128xf32>
    %c0_141 = arith.constant 0 : index
    %c0_142 = arith.constant 0 : index
    %c0_143 = arith.constant 0 : index
    %173 = vector.load %arg3[%c0_141, %c0_142, %c0_143] : memref<3x128x128xf32, #tpu.memory_space<vmem>>, vector<1x128x128xf32>
    %174 = vector.shape_cast %173 : vector<1x128x128xf32> to vector<128x128xf32>
    %cst_144 = arith.constant dense<0.000000e+00> : vector<17x128xf32>
    %175 = tpu.matmul %172, %174, %cst_144 {dimension_numbers = #tpu.dot_dimension_numbers<[1], [0], [0], [1], [0, 0, 1, 1], [], []>} : vector<17x128xf32>, vector<128x128xf32>, vector<17x128xf32> -> vector<17x128xf32>
    %c0_145 = arith.constant 0 : index
    %c1_146 = arith.constant 1 : index
    %c0_147 = arith.constant 0 : index
    %176 = vector.load %arg8[%c0_145, %c1_146, %c0_147] : memref<2x19x128xf32, #tpu.memory_space<vmem>>, vector<1x17x128xf32>
    %177 = vector.shape_cast %176 : vector<1x17x128xf32> to vector<17x128xf32>
    %c1_148 = arith.constant 1 : index
    %c0_149 = arith.constant 0 : index
    %c0_150 = arith.constant 0 : index
    %178 = vector.load %arg3[%c1_148, %c0_149, %c0_150] : memref<3x128x128xf32, #tpu.memory_space<vmem>>, vector<1x128x128xf32>
    %179 = vector.shape_cast %178 : vector<1x128x128xf32> to vector<128x128xf32>
    %cst_151 = arith.constant dense<0.000000e+00> : vector<17x128xf32>
    %180 = tpu.matmul %177, %179, %cst_151 {dimension_numbers = #tpu.dot_dimension_numbers<[1], [0], [0], [1], [0, 0, 1, 1], [], []>} : vector<17x128xf32>, vector<128x128xf32>, vector<17x128xf32> -> vector<17x128xf32>
    %181 = arith.addf %175, %180 : vector<17x128xf32>
    %c0_152 = arith.constant 0 : index
    %c2_153 = arith.constant 2 : index
    %c0_154 = arith.constant 0 : index
    %182 = vector.load %arg8[%c0_152, %c2_153, %c0_154] : memref<2x19x128xf32, #tpu.memory_space<vmem>>, vector<1x17x128xf32>
    %183 = vector.shape_cast %182 : vector<1x17x128xf32> to vector<17x128xf32>
    %c2_155 = arith.constant 2 : index
    %c0_156 = arith.constant 0 : index
    %c0_157 = arith.constant 0 : index
    %184 = vector.load %arg3[%c2_155, %c0_156, %c0_157] : memref<3x128x128xf32, #tpu.memory_space<vmem>>, vector<1x128x128xf32>
    %185 = vector.shape_cast %184 : vector<1x128x128xf32> to vector<128x128xf32>
    %cst_158 = arith.constant dense<0.000000e+00> : vector<17x128xf32>
    %186 = tpu.matmul %183, %185, %cst_158 {dimension_numbers = #tpu.dot_dimension_numbers<[1], [0], [0], [1], [0, 0, 1, 1], [], []>} : vector<17x128xf32>, vector<128x128xf32>, vector<17x128xf32> -> vector<17x128xf32>
    %187 = arith.addf %181, %186 : vector<17x128xf32>
    %c1_159 = arith.constant 1 : index
    %c0_160 = arith.constant 0 : index
    %c0_161 = arith.constant 0 : index
    %188 = vector.load %arg8[%c1_159, %c0_160, %c0_161] : memref<2x19x128xf32, #tpu.memory_space<vmem>>, vector<1x17x128xf32>
    %189 = vector.shape_cast %188 : vector<1x17x128xf32> to vector<17x128xf32>
    %c0_162 = arith.constant 0 : index
    %c0_163 = arith.constant 0 : index
    %c0_164 = arith.constant 0 : index
    %190 = vector.load %arg3[%c0_162, %c0_163, %c0_164] : memref<3x128x128xf32, #tpu.memory_space<vmem>>, vector<1x128x128xf32>
    %191 = vector.shape_cast %190 : vector<1x128x128xf32> to vector<128x128xf32>
    %cst_165 = arith.constant dense<0.000000e+00> : vector<17x128xf32>
    %192 = tpu.matmul %189, %191, %cst_165 {dimension_numbers = #tpu.dot_dimension_numbers<[1], [0], [0], [1], [0, 0, 1, 1], [], []>} : vector<17x128xf32>, vector<128x128xf32>, vector<17x128xf32> -> vector<17x128xf32>
    %c1_166 = arith.constant 1 : index
    %c1_167 = arith.constant 1 : index
    %c0_168 = arith.constant 0 : index
    %193 = vector.load %arg8[%c1_166, %c1_167, %c0_168] : memref<2x19x128xf32, #tpu.memory_space<vmem>>, vector<1x17x128xf32>
    %194 = vector.shape_cast %193 : vector<1x17x128xf32> to vector<17x128xf32>
    %c1_169 = arith.constant 1 : index
    %c0_170 = arith.constant 0 : index
    %c0_171 = arith.constant 0 : index
    %195 = vector.load %arg3[%c1_169, %c0_170, %c0_171] : memref<3x128x128xf32, #tpu.memory_space<vmem>>, vector<1x128x128xf32>
    %196 = vector.shape_cast %195 : vector<1x128x128xf32> to vector<128x128xf32>
    %cst_172 = arith.constant dense<0.000000e+00> : vector<17x128xf32>
    %197 = tpu.matmul %194, %196, %cst_172 {dimension_numbers = #tpu.dot_dimension_numbers<[1], [0], [0], [1], [0, 0, 1, 1], [], []>} : vector<17x128xf32>, vector<128x128xf32>, vector<17x128xf32> -> vector<17x128xf32>
    %198 = arith.addf %192, %197 : vector<17x128xf32>
    %c1_173 = arith.constant 1 : index
    %c2_174 = arith.constant 2 : index
    %c0_175 = arith.constant 0 : index
    %199 = vector.load %arg8[%c1_173, %c2_174, %c0_175] : memref<2x19x128xf32, #tpu.memory_space<vmem>>, vector<1x17x128xf32>
    %200 = vector.shape_cast %199 : vector<1x17x128xf32> to vector<17x128xf32>
    %c2_176 = arith.constant 2 : index
    %c0_177 = arith.constant 0 : index
    %c0_178 = arith.constant 0 : index
    %201 = vector.load %arg3[%c2_176, %c0_177, %c0_178] : memref<3x128x128xf32, #tpu.memory_space<vmem>>, vector<1x128x128xf32>
    %202 = vector.shape_cast %201 : vector<1x128x128xf32> to vector<128x128xf32>
    %cst_179 = arith.constant dense<0.000000e+00> : vector<17x128xf32>
    %203 = tpu.matmul %200, %202, %cst_179 {dimension_numbers = #tpu.dot_dimension_numbers<[1], [0], [0], [1], [0, 0, 1, 1], [], []>} : vector<17x128xf32>, vector<128x128xf32>, vector<17x128xf32> -> vector<17x128xf32>
    %204 = arith.addf %198, %203 : vector<17x128xf32>
    %cst_180 = arith.constant dense<0.000000e+00> : vector<128xf32>
    %205 = vector.multi_reduction <add>, %187, %cst_180 [0] : vector<17x128xf32> to vector<128xf32>
    %206 = vector.shape_cast %205 : vector<128xf32> to vector<1x128xf32>
    %cst_181 = arith.constant dense<0.000000e+00> : vector<128xf32>
    %207 = vector.multi_reduction <add>, %204, %cst_181 [0] : vector<17x128xf32> to vector<128xf32>
    %208 = vector.shape_cast %207 : vector<128xf32> to vector<1x128xf32>
    %209 = arith.addf %206, %208 : vector<1x128xf32>
    %cst_182 = arith.constant 0.0294117648 : f32
    %210 = vector.broadcast %cst_182 : f32 to vector<1x128xf32>
    %211 = arith.mulf %209, %210 : vector<1x128xf32>
    %212 = vector.broadcast %211 : vector<1x128xf32> to vector<17x128xf32>
    %213 = arith.subf %187, %212 : vector<17x128xf32>
    %214 = vector.broadcast %211 : vector<1x128xf32> to vector<17x128xf32>
    %215 = arith.subf %204, %214 : vector<17x128xf32>
    %216 = arith.mulf %213, %213 : vector<17x128xf32>
    %cst_183 = arith.constant dense<0.000000e+00> : vector<128xf32>
    %217 = vector.multi_reduction <add>, %216, %cst_183 [0] : vector<17x128xf32> to vector<128xf32>
    %218 = vector.shape_cast %217 : vector<128xf32> to vector<1x128xf32>
    %219 = arith.mulf %215, %215 : vector<17x128xf32>
    %cst_184 = arith.constant dense<0.000000e+00> : vector<128xf32>
    %220 = vector.multi_reduction <add>, %219, %cst_184 [0] : vector<17x128xf32> to vector<128xf32>
    %221 = vector.shape_cast %220 : vector<128xf32> to vector<1x128xf32>
    %222 = arith.addf %218, %221 : vector<1x128xf32>
    %cst_185 = arith.constant 0.0294117648 : f32
    %223 = vector.broadcast %cst_185 : f32 to vector<1x128xf32>
    %224 = arith.mulf %222, %223 : vector<1x128xf32>
    %cst_186 = arith.constant 9.99999974E-6 : f32
    %225 = vector.broadcast %cst_186 : f32 to vector<1x128xf32>
    %226 = arith.addf %224, %225 : vector<1x128xf32>
    %227 = math.rsqrt %226 : vector<1x128xf32>
    %228 = arith.mulf %227, %4 : vector<1x128xf32>
    %229 = vector.broadcast %228 : vector<1x128xf32> to vector<17x128xf32>
    %230 = arith.mulf %213, %229 : vector<17x128xf32>
    %231 = vector.broadcast %5 : vector<1x128xf32> to vector<17x128xf32>
    %232 = arith.addf %230, %231 : vector<17x128xf32>
    %cst_187 = arith.constant 0.000000e+00 : f32
    %233 = vector.broadcast %cst_187 : f32 to vector<17x128xf32>
    %234 = arith.maximumf %232, %233 : vector<17x128xf32>
    %235 = vector.broadcast %228 : vector<1x128xf32> to vector<17x128xf32>
    %236 = arith.mulf %215, %235 : vector<17x128xf32>
    %237 = vector.broadcast %5 : vector<1x128xf32> to vector<17x128xf32>
    %238 = arith.addf %236, %237 : vector<17x128xf32>
    %cst_188 = arith.constant 0.000000e+00 : f32
    %239 = vector.broadcast %cst_188 : f32 to vector<17x128xf32>
    %240 = arith.maximumf %238, %239 : vector<17x128xf32>
    %cst_189 = arith.constant dense<0.000000e+00> : vector<128xf32>
    %241 = vector.multi_reduction <add>, %234, %cst_189 [0] : vector<17x128xf32> to vector<128xf32>
    %242 = vector.shape_cast %241 : vector<128xf32> to vector<1x128xf32>
    %cst_190 = arith.constant dense<0.000000e+00> : vector<128xf32>
    %243 = vector.multi_reduction <add>, %240, %cst_190 [0] : vector<17x128xf32> to vector<128xf32>
    %244 = vector.shape_cast %243 : vector<128xf32> to vector<1x128xf32>
    %245 = tpu.concatenate %242, %244 in 0 : vector<1x128xf32>, vector<1x128xf32> -> vector<2x128xf32>
    %cst_191 = arith.constant 0.0588235296 : f32
    %246 = vector.broadcast %cst_191 : f32 to vector<2x128xf32>
    %247 = arith.mulf %245, %246 : vector<2x128xf32>
    %c0_192 = arith.constant 0 : index
    %c0_193 = arith.constant 0 : index
    %248 = vector.load %arg4[%c0_192, %c0_193] : memref<128x128xf32, #tpu.memory_space<vmem>>, vector<128x128xf32>
    %cst_194 = arith.constant dense<0.000000e+00> : vector<2x128xf32>
    %249 = tpu.matmul %247, %248, %cst_194 {dimension_numbers = #tpu.dot_dimension_numbers<[1], [0], [0], [1], [0, 0, 1, 1], [], []>} : vector<2x128xf32>, vector<128x128xf32>, vector<2x128xf32> -> vector<2x128xf32>
    %250 = vector.broadcast %6 : vector<1x128xf32> to vector<2x128xf32>
    %251 = arith.addf %249, %250 : vector<2x128xf32>
    %c0_195 = arith.constant 0 : index
    %c0_196 = arith.constant 0 : index
    %252 = vector.load %arg6[%c0_195, %c0_196] : memref<2x128xf32, #tpu.memory_space<vmem>>, vector<2x128xf32>
    tpu.vector_store %arg6[%c0_195, %c0_196], %251 {strides = array<i32>} : memref<2x128xf32, #tpu.memory_space<vmem>>, vector<2x128xf32>,
    return
  }
}

</mosaic_0001>

<bundles_post_ra>
// kernel: resnet1d_forward.1
= control target key start
LH: loop header
LB: loop body
LE: loop exit
PB: predicated region body
PF: predicated region fallthrough
CT: control target
= control target key end

     0   :  { %v3210_v1 = vmov 0.0   ;;  %vm3211_vm0 = vmmov 0   ;;  %s4769_s0 = inlined_call_operand.vmem [shape: f32[34,128], index: 0, kind: input, shape index: {}]   ;;  %s4770_s1 = inlined_call_operand.vmem [shape: f32[128,128], index: 1, kind: input, shape index: {}]   ;;  %s4771_s2 = inlined_call_operand.vmem [shape: f32[5,128,128], index: 2, kind: input, shape index: {}]   ;;  %s4772_s3 = inlined_call_operand.vmem [shape: f32[3,128,128], index: 3, kind: input, shape index: {}]   ;;  %s4773_s4 = inlined_call_operand.vmem [shape: f32[128,128], index: 4, kind: input, shape index: {}]   ;;  %s4774_s5 = inlined_call_operand.vmem [shape: f32[8,128], index: 5, kind: input, shape index: {}]   ;;  %s4775_s6 = inlined_call_operand.hbm [shape: f32[2,128], index: 6, kind: output, shape index: {}]  }
   0x1   :  { %v51_v0 = vld [vmem:[%s4770_s1 + $0x78] sm:$0xff]  ;;  %2441 = vmatprep.subr.mxu0 %v3210_v1  ;;  %203 = vst [vmem:[#allocation2] sm:$0x3] %v3210_v1  ;;  %204 = vst [vmem:[#allocation2 + $0x13] sm:$0x3] %v3210_v1  ;;  %v50_v2 = vld [vmem:[%s4770_s1 + $0x70] sm:$0xff]  ;;  %2473 = vmatprep.mubr.msk.f32.mxu0 %vm3211_vm0, %v3210_v1 }
   0x2   :  { %209 = vst [vmem:[#allocation2 + $0x18] sm:$0x3] %v3210_v1  ;;  %210 = vst [vmem:[#allocation2 + $0x2b] sm:$0x3] %v3210_v1  ;;  %2442 = vmatpush3.msra.mxu0 %v51_v0  ;;  %2488 = vmatprep.subr.mxu1 %v3210_v1  ;;  %v49_v3 = vld [vmem:[%s4770_s1 + $0x68] sm:$0xff]  ;;  %v48_v4 = vld [vmem:[%s4770_s1 + $0x60] sm:$0xff] }
   0x3   :  { %1228 = vst [vmem:[#allocation3] sm:$0x1] %v3210_v1  ;;  %1229 = vst [vmem:[#allocation3 + $0x12] sm:$0x1] %v3210_v1  ;;  %2443 = vmatprep.subr.mxu0 %v3210_v1  ;;  %2520 = vmatprep.mubr.msk.f32.mxu1 %vm3211_vm0, %v3210_v1  ;;  %v47_v5 = vld [vmem:[%s4770_s1 + $0x58] sm:$0xff] }
   0x4   :  { %1234 = vst [vmem:[#allocation3 + $0x18] sm:$0x1] %v3210_v1  ;;  %1235 = vst [vmem:[#allocation3 + $0x2a] sm:$0x1] %v3210_v1  ;;  %2444 = vmatpush3.msra.mxu0 %v50_v2 }
   0x5   :  { %2445 = vmatprep.subr.mxu0 %v3210_v1 }
   0x6   :  { %2446 = vmatpush3.msra.mxu0 %v49_v3 }
   0x7   :  { %2447 = vmatprep.subr.mxu0 %v3210_v1 }
   0x8   :  { %11 = vsyncpa [#allocation5], 0  ;;  %2448 = vmatpush3.msra.mxu0 %v48_v4  ;;  %v46_v6 = vld [vmem:[%s4770_s1 + $0x50] sm:$0xff]  ;;  %v45_v7 = vld [vmem:[%s4770_s1 + $0x48] sm:$0xff]  ;;  %vm145_vm1 = vcmask 1041408   ;;  %vm1147_vm2 = vcmask 1040384  }
   0x9   :  { %2449 = vmatprep.subr.mxu0 %v3210_v1  ;;  %v44_v8 = vld [vmem:[%s4770_s1 + $0x40] sm:$0xff]  ;;  %v43_v9 = vld [vmem:[%s4770_s1 + $0x38] sm:$0xff]  ;;  %v42_v10 = vld [vmem:[%s4770_s1 + $0x30] sm:$0xff] }
   0xa   :  { %2450 = vmatpush3.msra.mxu0 %v47_v5  ;;  %v41_v11 = vld [vmem:[%s4770_s1 + $0x28] sm:$0xff]  ;;  %v40_v12 = vld [vmem:[%s4770_s1 + $0x20] sm:$0xff]  ;;  %v39_v13 = vld [vmem:[%s4770_s1 + $0x18] sm:$0xff] }
   0xb   :  { %2451 = vmatprep.subr.mxu0 %v3210_v1  ;;  %v38_v14 = vld [vmem:[%s4770_s1 + $0x10] sm:$0xff]  ;;  %v37_v15 = vld [vmem:[%s4770_s1 + $0x8] sm:$0xff]  ;;  %v36_v16 = vld [vmem:[%s4770_s1] sm:$0xff] }
   0xc   :  { %2452 = vmatpush3.msra.mxu0 %v46_v6  ;;  %v31_v17 = vld [vmem:[%s4769_s0] sm:$0xff]  ;;  %v32_v18 = vld [vmem:[%s4769_s0 + $0x8] sm:$0xff]  ;;  %v33_v19 = vld [vmem:[%s4769_s0 + $0x10] sm:$0xff] }
   0xd   :  { %2453 = vmatprep.subr.mxu0 %v3210_v1  ;;  %v34_v20 = vld [vmem:[%s4769_s0 + $0x18] sm:$0xff]  ;;  %v35_v21 = vld [vmem:[%s4769_s0 + $0x20] sm:$0x3]  ;;  %v3368_v24 = vld [vmem:[%s4771_s2 + $0xf0] sm:$0xff] }
   0xe   :  { %2454 = vmatpush3.msra.mxu0 %v45_v7  ;;  %v3354_v22 = vld [vmem:[%s4771_s2 + $0xf8] sm:$0xff]  ;;  %v3373_v25 = vld [vmem:[%s4771_s2 + $0x70] sm:$0xff]  ;;  %v3382_v26 = vld [vmem:[%s4771_s2 + $0xe8] sm:$0xff] }
   0xf   :  { %2455 = vmatprep.subr.mxu0 %v3210_v1  ;;  %v3359_v23 = vld [vmem:[%s4771_s2 + $0x78] sm:$0xff]  ;;  %2489 = vmatpush3.msra.mxu1 %v3354_v22  ;;  %v3387_v27 = vld [vmem:[%s4771_s2 + $0x68] sm:$0xff]  ;;  %v3396_v28 = vld [vmem:[%s4771_s2 + $0xe0] sm:$0xff] }
  0x10   :  { %2456 = vmatpush3.msra.mxu0 %v44_v8  ;;  %2490 = vmatprep.subr.mxu1 %v3210_v1  ;;  %v3401_v29 = vld [vmem:[%s4771_s2 + $0x60] sm:$0xff]  ;;  %v3410_v30 = vld [vmem:[%s4771_s2 + $0xd8] sm:$0xff]  ;;  %v3424_v32 = vld [vmem:[%s4771_s2 + $0xd0] sm:$0xff] }
  0x11   :  { %2457 = vmatprep.subr.mxu0 %v3210_v1  ;;  %2491 = vmatpush3.msra.mxu1 %v3368_v24  ;;  %v3415_v31 = vld [vmem:[%s4771_s2 + $0x58] sm:$0xff]  ;;  %v3429_v33 = vld [vmem:[%s4771_s2 + $0x50] sm:$0xff]  ;;  %v3438_v34 = vld [vmem:[%s4771_s2 + $0xc8] sm:$0xff] }
  0x12   :  { %2458 = vmatpush3.msra.mxu0 %v43_v9  ;;  %2492 = vmatprep.subr.mxu1 %v3210_v1  ;;  %v3443_v35 = vld [vmem:[%s4771_s2 + $0x48] sm:$0xff]  ;;  %v3452_v36 = vld [vmem:[%s4771_s2 + $0xc0] sm:$0xff]  ;;  %v3466_v38 = vld [vmem:[%s4771_s2 + $0xb8] sm:$0xff] }
  0x13   :  { %2459 = vmatprep.subr.mxu0 %v3210_v1  ;;  %2493 = vmatpush3.msra.mxu1 %v3382_v26  ;;  %v3457_v37 = vld [vmem:[%s4771_s2 + $0x40] sm:$0xff]  ;;  %v3471_v39 = vld [vmem:[%s4771_s2 + $0x38] sm:$0xff]  ;;  %v3480_v40 = vld [vmem:[%s4771_s2 + $0xb0] sm:$0xff] }
  0x14   :  { %2460 = vmatpush3.msra.mxu0 %v42_v10  ;;  %2494 = vmatprep.subr.mxu1 %v3210_v1  ;;  %v3485_v41 = vld [vmem:[%s4771_s2 + $0x30] sm:$0xff]  ;;  %v3494_v42 = vld [vmem:[%s4771_s2 + $0xa8] sm:$0xff]  ;;  %v3508_v44 = vld [vmem:[%s4771_s2 + $0xa0] sm:$0xff] }
  0x15   :  { %2461 = vmatprep.subr.mxu0 %v3210_v1  ;;  %2495 = vmatpush3.msra.mxu1 %v3396_v28  ;;  %v3499_v43 = vld [vmem:[%s4771_s2 + $0x28] sm:$0xff]  ;;  %v3513_v45 = vld [vmem:[%s4771_s2 + $0x20] sm:$0xff]  ;;  %v3522_v46 = vld [vmem:[%s4771_s2 + $0x98] sm:$0xff] }
  0x16   :  { %2462 = vmatpush3.msra.mxu0 %v41_v11  ;;  %2496 = vmatprep.subr.mxu1 %v3210_v1  ;;  %v3527_v47 = vld [vmem:[%s4771_s2 + $0x18] sm:$0xff]  ;;  %v3534_v48 = vld [vmem:[%s4771_s2 + $0x90] sm:$0xff]  ;;  %v3546_v50 = vld [vmem:[%s4771_s2 + $0x88] sm:$0xff] }
  0x17   :  { %2463 = vmatprep.subr.mxu0 %v3210_v1  ;;  %2497 = vmatpush3.msra.mxu1 %v3410_v30  ;;  %v3539_v49 = vld [vmem:[%s4771_s2 + $0x10] sm:$0xff]  ;;  %v3551_v51 = vld [vmem:[%s4771_s2 + $0x8] sm:$0xff]  ;;  %v3560_v52 = vld [vmem:[%s4771_s2 + $0x80] sm:$0xff] }
  0x18   :  { %2464 = vmatpush3.msra.mxu0 %v40_v12  ;;  %2498 = vmatprep.subr.mxu1 %v3210_v1  ;;  %v3565_v53 = vld [vmem:[%s4771_s2] sm:$0xff] }
  0x19   :  { %2465 = vmatprep.subr.mxu0 %v3210_v1  ;;  %2499 = vmatpush3.msra.mxu1 %v3424_v32 }
  0x1a   :  { %2466 = vmatpush3.msra.mxu0 %v39_v13  ;;  %2500 = vmatprep.subr.mxu1 %v3210_v1 }
  0x1b   :  { %2467 = vmatprep.subr.mxu0 %v3210_v1  ;;  %2501 = vmatpush3.msra.mxu1 %v3438_v34 }
  0x1c   :  { %2468 = vmatpush3.msra.mxu0 %v38_v14  ;;  %2502 = vmatprep.subr.mxu1 %v3210_v1 }
  0x1d   :  { %2469 = vmatprep.subr.mxu0 %v3210_v1  ;;  %2503 = vmatpush3.msra.mxu1 %v3452_v36 }
  0x1e   :  { %2470 = vmatpush3.msra.mxu0 %v37_v15  ;;  %2504 = vmatprep.subr.mxu1 %v3210_v1 }
  0x1f   :  { %2471 = vmatprep.subr.mxu0 %v3210_v1  ;;  %2505 = vmatpush3.msra.mxu1 %v3466_v38 }
  0x20   :  { %2472 = vmatpush3.msra.mxu0 %v36_v16  ;;  %2506 = vmatprep.subr.mxu1 %v3210_v1 }
  0x21   :  { %2474 = vmatmul.mubr.f32.vlgmr.msra.gmra.mxu0 %v31_v17  ;;  %2529 = vmatprep.subr.mxu0 %v3210_v1 }
  0x22   :  { %2476 = vmatprep.mubr.msk.f32.mxu0 %vm3211_vm0, %v3210_v1  ;;  %2530 = vmatpush3.msra.mxu0 %v3359_v23 }
  0x23   :  { %2531 = vmatprep.subr.mxu0 %v3210_v1  ;;  %2507 = vmatpush3.msra.mxu1 %v3480_v40 }
  0x24   :  { %2532 = vmatpush3.msra.mxu0 %v3373_v25  ;;  %2508 = vmatprep.subr.mxu1 %v3210_v1 }
  0x25   :  { %2477 = vmatmul.mubr.f32.gmra.mxu0 %v32_v18  ;;  %2533 = vmatprep.subr.mxu0 %v3210_v1 }
  0x26   :  { %2479 = vmatprep.mubr.msk.f32.mxu0 %vm3211_vm0, %v3210_v1  ;;  %2534 = vmatpush3.msra.mxu0 %v3387_v27 }
  0x27   :  { %2535 = vmatprep.subr.mxu0 %v3210_v1  ;;  %2509 = vmatpush3.msra.mxu1 %v3494_v42 }
  0x28   :  { %2536 = vmatpush3.msra.mxu0 %v3401_v29  ;;  %2510 = vmatprep.subr.mxu1 %v3210_v1 }
  0x29   :  { %2480 = vmatmul.mubr.f32.gmra.mxu0 %v33_v19  ;;  %2537 = vmatprep.subr.mxu0 %v3210_v1 }
  0x2a   :  { %2482 = vmatprep.mubr.msk.f32.mxu0 %vm3211_vm0, %v3210_v1  ;;  %2538 = vmatpush3.msra.mxu0 %v3415_v31 }
  0x2b   :  { %2539 = vmatprep.subr.mxu0 %v3210_v1  ;;  %2511 = vmatpush3.msra.mxu1 %v3508_v44 }
  0x2c   :  { %2540 = vmatpush3.msra.mxu0 %v3429_v33  ;;  %2512 = vmatprep.subr.mxu1 %v3210_v1 }
  0x2d   :  { %2483 = vmatmul.mubr.f32.gmra.mxu0 %v34_v20  ;;  %2541 = vmatprep.subr.mxu0 %v3210_v1 }
  0x2e   :  { %2485 = vmatprep.mubr.msk.f32.mxu0 %vm3211_vm0, %v3210_v1  ;;  %2542 = vmatpush3.msra.mxu0 %v3443_v35 }
  0x2f   :  { %2543 = vmatprep.subr.mxu0 %v3210_v1  ;;  %2513 = vmatpush3.msra.mxu1 %v3522_v46 }
  0x30   :  { %2544 = vmatpush3.msra.mxu0 %v3457_v37  ;;  %2514 = vmatprep.subr.mxu1 %v3210_v1 }
  0x31   :  { %2486 = vmatmul.mubr.f32.gmra.mxu0 %v35_v21  ;;  %2545 = vmatprep.subr.mxu0 %v3210_v1 }
  0x32   :  { %2561 = vmatprep.mubr.msk.f32.mxu0 %vm3211_vm0, %v3210_v1  ;;  %2546 = vmatpush3.msra.mxu0 %v3471_v39 }
  0x33   :  { %2547 = vmatprep.subr.mxu0 %v3210_v1  ;;  %2515 = vmatpush3.msra.mxu1 %v3534_v48 }
  0x34   :  { %2548 = vmatpush3.msra.mxu0 %v3485_v41  ;;  %2516 = vmatprep.subr.mxu1 %v3210_v1 }
  0x35   :  { %2549 = vmatprep.subr.mxu0 %v3210_v1  ;;  %2517 = vmatpush3.msra.mxu1 %v3546_v50 }
  0x36   :  { %2550 = vmatpush3.msra.mxu0 %v3499_v43  ;;  %2518 = vmatprep.subr.mxu1 %v3210_v1 }
  0x37   :  { %2551 = vmatprep.subr.mxu0 %v3210_v1  ;;  %2519 = vmatpush3.msra.mxu1 %v3560_v52 }
  0x38   :  { %2552 = vmatpush3.msra.mxu0 %v3513_v45  ;;  %2570 = vmatprep.subr.mxu1 %v3210_v1 }
  0x39   :  { %2553 = vmatprep.subr.mxu0 %v3210_v1 }
  0x3a   :  { %2554 = vmatpush3.msra.mxu0 %v3527_v47 }
  0x3b   :  { %2555 = vmatprep.subr.mxu0 %v3210_v1 }
  0x3c   :  { %2556 = vmatpush3.msra.mxu0 %v3539_v49 }
  0x3d   :  { %2557 = vmatprep.subr.mxu0 %v3210_v1 }
  0x3e   :  { %2558 = vmatpush3.msra.mxu0 %v3551_v51 }
  0x3f   :  { %2559 = vmatprep.subr.mxu0 %v3210_v1 }
  0x40   :  { %2560 = vmatpush3.msra.mxu0 %v3565_v53 }
  0x41   :  { %2611 = vmatprep.subr.mxu0 %v3210_v1 }
  0xe1   :  { %v118_v54 = vpop.f32.mrf.mxu0 }
  0xe3   :  { %v2475_v55 = vpop.f32.mrf.mxu0 }
  0xe5   :  { %v123_v56 = vpop.f32.mrf.mxu0 }
  0xe6   :  { %v142_v60 = vadd.f32 %v123_v56, %v118_v54 }
  0xe7   :  { %v2478_v57 = vpop.f32.mrf.mxu0 }
  0xe9   :  { %v128_v58 = vpop.f32.mrf.mxu0 }
  0xea   :  { %v143_v62 = vadd.f32 %v142_v60, %v128_v58 }
  0xeb   :  { %v2481_v59 = vpop.f32.mrf.mxu0 }
  0xed   :  { %v133_v61 = vpop.f32.mrf.mxu0 }
  0xee   :  { %v144_v0 = vadd.f32 %v143_v62, %v133_v61 }
  0xef   :  { %v2484_v63 = vpop.f32.mrf.mxu0 }
  0xf1   :  { %v138_v2 = vpop.f32.mrf.mxu0 }
  0xf2   :  { %v146_v3 = vsel %vm145_vm1, %v138_v2, 0.0 }
  0xf3   :  { %v147_v4 = vadd.f32 %v146_v3, %v144_v0  ;;  %v2487_v5 = vpop.f32.mrf.mxu0 }
  0xf5   :  { %v148_v6 = vrot.slane %v147_v4, 4 }
  0xf7   :  { %v149_v7 = vadd.f32 %v148_v6, %v147_v4 }
  0xf9   :  { %v150_v8 = vrot.slane %v149_v7, 2 }
  0xfb   :  { %v151_v9 = vadd.f32 %v150_v8, %v149_v7  ;;  %v24_v7 = vld [vmem:[%s4774_s5] sm:$0x1] }
  0xfd   :  { %v152_v10 = vrot.slane %v151_v9, 1 }
  0xff   :  { %v153_v11 = vadd.f32 %v152_v10, %v151_v9 }
 0x101   :  { %v154_v12 = vmul.f32 0.029411765, %v153_v11 }
 0x103   :  { %v155_v13 = vsub.f32 %v118_v54, %v154_v12  ;;  %v156_v14 = vsub.f32 %v123_v56, %v154_v12  ;;  %v157_v15 = vsub.f32 %v128_v58, %v154_v12  ;;  %v159_v16 = vsub.f32 %v138_v2, %v154_v12 }
 0x104   :  { %v158_v17 = vsub.f32 %v133_v61, %v154_v12  ;;  %v180_v61 = vlaneseq  ;;  %v1999_v12 = vld [vmem:[%s4774_s5 + $0x1] ss:$0 sm:$0xff] }
 0x105   :  { %v160_v18 = vmul.f32 %v155_v13, %v155_v13  ;;  %v161_v19 = vmul.f32 %v156_v14, %v156_v14  ;;  %v162_v20 = vmul.f32 %v157_v15, %v157_v15  ;;  %v164_v55 = vmul.f32 %v159_v16, %v159_v16 }
 0x106   :  { %v163_v57 = vmul.f32 %v158_v17, %v158_v17  ;;  %v181_v6 = vshrl.u32 %v180_v61, 7 }
 0x107   :  { %v165_v21 = vadd.f32 %v161_v19, %v160_v18  ;;  %v168_v62 = vsel %vm145_vm1, %v164_v55, 0.0 }
 0x108   :  { %v3580_v8 = vsub.s32 0, %v181_v6 }
 0x109   :  { %v166_v59 = vadd.f32 %v165_v21, %v162_v20 }
 0x10a   :  { %4789 = vst [vmem:[#allocation7_spill] sm:$0xff] %v3580_v8 }
 0x10b   :  { %v167_v60 = vadd.f32 %v166_v59, %v163_v57 }
 0x10d   :  { %v169_v63 = vadd.f32 %v168_v62, %v167_v60 }
 0x10f   :  { %v170_v0 = vrot.slane %v169_v63, 4 }
 0x111   :  { %v171_v3 = vadd.f32 %v170_v0, %v169_v63 }
 0x113   :  { %v172_v4 = vrot.slane %v171_v3, 2 }
 0x115   :  { %v173_v5 = vadd.f32 %v172_v4, %v171_v3 }
 0x117   :  { %v174_v54 = vrot.slane %v173_v5, 1 }
 0x119   :  { %v175_v56 = vadd.f32 %v174_v54, %v173_v5  ;;  %v3614_v54 = vld [vmem:[%s4771_s2 + $0x170] sm:$0xff] }
 0x11b   :  { %v176_v58 = vmul.f32 0.029411765, %v175_v56  ;;  %v3619_v56 = vld [vmem:[%s4771_s2 + $0x1f0] sm:$0xff] }
 0x11d   :  { %v177_v2 = vadd.f32 1e-05, %v176_v58  ;;  %v3634_v58 = vld [vmem:[%s4771_s2 + $0x168] sm:$0xff] }
 0x11f   :  { %3182 = vrsqrt.f32 %v177_v2  ;;  %v3639_v2 = vld [vmem:[%s4771_s2 + $0x1e8] sm:$0xff] }
 0x12c   :  { %v3183_v9 = vpop.eup %3182 }
 0x12d   :  { %v179_v10 = vmul.f32 %v3183_v9, %v24_v7  ;;  %v3646_v7 = vld [vmem:[%s4771_s2 + $0x160] sm:$0xff] }
 0x12e   :  { %v3651_v9 = vld [vmem:[%s4771_s2 + $0x1e0] sm:$0xff] }
 0x12f   :  { %v183_v11 = vrot.slane %v179_v10, %v3580_v8  ;;  %v3666_v10 = vld [vmem:[%s4771_s2 + $0x158] sm:$0xff]  ;;  %v3795_v8 = vld [vmem:[%s4771_s2 + $0x190] sm:$0xff] }
 0x130   :  { %4795 = vst [vmem:[#allocation13_spill] sm:$0xff] %v3795_v8 }
 0x131   :  { %v184_v18 = vmul.f32 %v183_v11, %v155_v13  ;;  %v185_v19 = vmul.f32 %v183_v11, %v156_v14  ;;  %v186_v20 = vmul.f32 %v183_v11, %v157_v15  ;;  %v187_v21 = vmul.f32 %v183_v11, %v158_v17  ;;  %v3604_v14 = vld [vmem:[%s4771_s2 + $0x178] sm:$0xff] }
 0x132   :  { %v188_v55 = vmul.f32 %v183_v11, %v159_v16  ;;  %v3609_v15 = vld [vmem:[%s4771_s2 + $0x1f8] sm:$0xff] }
 0x133   :  { %v3586_v57 = vadd.f32 %v1999_v12, %v184_v18  ;;  %v3588_v59 = vadd.f32 %v1999_v12, %v185_v19  ;;  %v195_v60 = vadd.f32 %v1999_v12, %v186_v20  ;;  %v3590_v62 = vadd.f32 %v1999_v12, %v187_v21  ;;  %v3671_v11 = vld [vmem:[%s4771_s2 + $0x1d8] sm:$0xff]  ;;  %v3678_v19 = vld [vmem:[%s4771_s2 + $0x150] sm:$0xff]  ;;  %v3692_v21 = vld [vmem:[%s4771_s2 + $0x148] sm:$0xff] }
 0x134   :  { %v197_v63 = vadd.f32 %v1999_v12, %v188_v55  ;;  %v3683_v20 = vld [vmem:[%s4771_s2 + $0x1d0] sm:$0xff]  ;;  %v3697_v55 = vld [vmem:[%s4771_s2 + $0x1c8] sm:$0xff] }
 0x135   :  { %v4778_v0 = vmax.f32 %v3586_v57, 0.0  ;;  %v4777_v3 = vmax.f32 %v3588_v59, 0.0  ;;  %v200_v4 = vmax.f32 %v195_v60, 0.0  ;;  %v4776_v5 = vmax.f32 %v3590_v62, 0.0  ;;  %v3706_v60 = vld [vmem:[%s4771_s2 + $0x140] sm:$0xff] }
 0x136   :  { %v202_v13 = vmax.f32 %v197_v63, 0.0  ;;  %v3711_v63 = vld [vmem:[%s4771_s2 + $0x1c0] sm:$0xff] }
 0x137   :  { %205 = vst [vmem:[#allocation2 + $0x2] sm:$0xff] %v4778_v0  ;;  %206 = vst [vmem:[#allocation2 + $0xa] sm:$0xff] %v4777_v3  ;;  %v3781_v3 = vld [vmem:[%s4771_s2 + $0x198] sm:$0xff]  ;;  %v3790_v0 = vld [vmem:[%s4771_s2 + $0x110] sm:$0xff] }
 0x138   :  { %207 = vst [vmem:[#allocation2 + $0x12] sm:$0x1] %v200_v4  ;;  %211 = vst [vmem:[#allocation2 + $0x19] sm:$0xfe] %v200_v4  ;;  %v3720_v4 = vld [vmem:[%s4771_s2 + $0x138] sm:$0xff] }
 0x139   :  { %212 = vst [vmem:[#allocation2 + $0x21] sm:$0xff] %v4776_v5  ;;  %213 = vst [vmem:[#allocation2 + $0x29] sm:$0x3] %v202_v13  ;;  %v3725_v13 = vld [vmem:[%s4771_s2 + $0x1b8] sm:$0xff] }
 0x13a   :  { %4790 = vst [vmem:[#allocation8_spill] sm:$0xff] %v3725_v13  ;;  %v3776_v5 = vld [vmem:[%s4771_s2 + $0x118] sm:$0xff]  ;;  %4794 = vst [vmem:[#allocation12_spill] sm:$0xff] %v3781_v3 }
 0x13e   :  { %v233_v16 = vld [vmem:[#allocation2 + $0x1] sm:$0xff]  ;;  %v234_v61 = vld [vmem:[#allocation2 + $0x9] sm:$0xff]  ;;  %v235_v12 = vld [vmem:[#allocation2 + $0x11] sm:$0x1] }
 0x13f   :  { %v214_v17 = vld [vmem:[#allocation2] sm:$0xff]  ;;  %2521 = vmatmul.mubr.f32.vlgmr.msra.gmra.mxu1 %v233_v16  ;;  %v215_v6 = vld [vmem:[#allocation2 + $0x8] sm:$0xff]  ;;  %v216_v18 = vld [vmem:[#allocation2 + $0x10] sm:$0x1] }
 0x140   :  { %2562 = vmatmul.mubr.f32.vlgmr.msra.gmra.mxu0 %v214_v17  ;;  %2571 = vmatpush3.msra.mxu1 %v3604_v14  ;;  %v3734_v16 = vld [vmem:[%s4771_s2 + $0x130] sm:$0xff] }
 0x141   :  { %2612 = vmatpush3.msra.mxu0 %v3609_v15  ;;  %2572 = vmatprep.subr.mxu1 %v3210_v1  ;;  %v3739_v17 = vld [vmem:[%s4771_s2 + $0x1b0] sm:$0xff] }
 0x142   :  { %2613 = vmatprep.subr.mxu0 %v3210_v1  ;;  %2573 = vmatpush3.msra.mxu1 %v3614_v54  ;;  %4791 = vst [vmem:[#allocation9_spill] sm:$0xff] %v3739_v17 }
 0x143   :  { %2614 = vmatpush3.msra.mxu0 %v3619_v56  ;;  %2523 = vmatprep.mubr.msk.f32.mxu1 %vm3211_vm0, %v3210_v1 }
 0x144   :  { %2564 = vmatprep.mubr.msk.f32.mxu0 %vm3211_vm0, %v3210_v1  ;;  %2574 = vmatprep.subr.mxu1 %v3210_v1 }
 0x145   :  { %2615 = vmatprep.subr.mxu0 %v3210_v1  ;;  %2524 = vmatmul.mubr.f32.gmra.mxu1 %v234_v61  ;;  %v3748_v61 = vld [vmem:[%s4771_s2 + $0x128] sm:$0xff] }
 0x146   :  { %2565 = vmatmul.mubr.f32.gmra.mxu0 %v215_v6  ;;  %2575 = vmatpush3.msra.mxu1 %v3634_v58  ;;  %v3753_v6 = vld [vmem:[%s4771_s2 + $0x1a8] sm:$0xff] }
 0x147   :  { %2616 = vmatpush3.msra.mxu0 %v3639_v2  ;;  %2576 = vmatprep.subr.mxu1 %v3210_v1  ;;  %4792 = vst [vmem:[#allocation10_spill] sm:$0xff] %v3753_v6 }
 0x148   :  { %2617 = vmatprep.subr.mxu0 %v3210_v1  ;;  %2577 = vmatpush3.msra.mxu1 %v3646_v7 }
 0x149   :  { %2618 = vmatpush3.msra.mxu0 %v3651_v9  ;;  %2526 = vmatprep.mubr.msk.f32.mxu1 %vm3211_vm0, %v3210_v1 }
 0x14a   :  { %2567 = vmatprep.mubr.msk.f32.mxu0 %vm3211_vm0, %v3210_v1  ;;  %2578 = vmatprep.subr.mxu1 %v3210_v1 }
 0x14b   :  { %2619 = vmatprep.subr.mxu0 %v3210_v1  ;;  %2527 = vmatmul.mubr.f32.gmra.mxu1 %v235_v12  ;;  %v3762_v12 = vld [vmem:[%s4771_s2 + $0x120] sm:$0xff] }
 0x14c   :  { %2568 = vmatmul.mubr.f32.gmra.mxu0 %v216_v18  ;;  %2579 = vmatpush3.msra.mxu1 %v3666_v10  ;;  %v3767_v18 = vld [vmem:[%s4771_s2 + $0x1a0] sm:$0xff] }
 0x14d   :  { %2620 = vmatpush3.msra.mxu0 %v3671_v11  ;;  %2580 = vmatprep.subr.mxu1 %v3210_v1  ;;  %4793 = vst [vmem:[#allocation11_spill] sm:$0xff] %v3767_v18 }
 0x14e   :  { %2621 = vmatprep.subr.mxu0 %v3210_v1  ;;  %2581 = vmatpush3.msra.mxu1 %v3678_v19 }
 0x14f   :  { %2622 = vmatpush3.msra.mxu0 %v3683_v20  ;;  %2582 = vmatprep.subr.mxu1 %v3210_v1 }
 0x150   :  { %2623 = vmatprep.subr.mxu0 %v3210_v1  ;;  %2583 = vmatpush3.msra.mxu1 %v3692_v21 }
 0x151   :  { %2624 = vmatpush3.msra.mxu0 %v3697_v55  ;;  %2584 = vmatprep.subr.mxu1 %v3210_v1 }
 0x152   :  { %2625 = vmatprep.subr.mxu0 %v3210_v1  ;;  %2585 = vmatpush3.msra.mxu1 %v3706_v60 }
 0x153   :  { %2626 = vmatpush3.msra.mxu0 %v3711_v63  ;;  %2586 = vmatprep.subr.mxu1 %v3210_v1 }
 0x154   :  { %2627 = vmatprep.subr.mxu0 %v3210_v1  ;;  %2587 = vmatpush3.msra.mxu1 %v3720_v4 }
 0x155   :  { %2628 = vmatpush3.msra.mxu0 %v3725_v13  ;;  %2588 = vmatprep.subr.mxu1 %v3210_v1  ;;  %v4798_v13 = vmax.f32 %v3586_v57, 0.0  ;;  %v3862_v57 = vld [vmem:[%s4771_s2 + $0x268] sm:$0xff] }
 0x156   :  { %2629 = vmatprep.subr.mxu0 %v3210_v1  ;;  %2589 = vmatpush3.msra.mxu1 %v3734_v16 }
 0x157   :  { %2630 = vmatpush3.msra.mxu0 %v3739_v17  ;;  %2590 = vmatprep.subr.mxu1 %v3210_v1  ;;  %v3825_v17 = vld [vmem:[%s4771_s2 + $0x180] sm:$0xff] }
 0x158   :  { %2631 = vmatprep.subr.mxu0 %v3210_v1  ;;  %2591 = vmatpush3.msra.mxu1 %v3748_v61  ;;  %4797 = vst [vmem:[#allocation15_spill] sm:$0xff] %v3825_v17 }
 0x159   :  { %2632 = vmatpush3.msra.mxu0 %v3753_v6  ;;  %2592 = vmatprep.subr.mxu1 %v3210_v1  ;;  %v3809_v6 = vld [vmem:[%s4771_s2 + $0x188] sm:$0xff] }
 0x15a   :  { %2633 = vmatprep.subr.mxu0 %v3210_v1  ;;  %2593 = vmatpush3.msra.mxu1 %v3762_v12  ;;  %4796 = vst [vmem:[#allocation14_spill] sm:$0xff] %v3809_v6 }
 0x15b   :  { %2634 = vmatpush3.msra.mxu0 %v3767_v18  ;;  %2594 = vmatprep.subr.mxu1 %v3210_v1  ;;  %v3804_v18 = vld [vmem:[%s4771_s2 + $0x108] sm:$0xff] }
 0x15c   :  { %2635 = vmatprep.subr.mxu0 %v3210_v1  ;;  %2595 = vmatpush3.msra.mxu1 %v3776_v5 }
 0x15d   :  { %2636 = vmatpush3.msra.mxu0 %v3781_v3  ;;  %2596 = vmatprep.subr.mxu1 %v3210_v1  ;;  %v3818_v3 = vld [vmem:[%s4771_s2 + $0x100] sm:$0xff] }
 0x15e   :  { %2637 = vmatprep.subr.mxu0 %v3210_v1  ;;  %2597 = vmatpush3.msra.mxu1 %v3790_v0 }
 0x15f   :  { %2638 = vmatpush3.msra.mxu0 %v3795_v8  ;;  %2598 = vmatprep.subr.mxu1 %v3210_v1  ;;  %v3838_v8 = vld [vmem:[%s4771_s2 + $0x278] sm:$0xff] }
 0x160   :  { %2639 = vmatprep.subr.mxu0 %v3210_v1  ;;  %2599 = vmatpush3.msra.mxu1 %v3804_v18 }
 0x161   :  { %2640 = vmatpush3.msra.mxu0 %v3809_v6  ;;  %2600 = vmatprep.subr.mxu1 %v3210_v1  ;;  %v516_v6 = vld [vmem:[#allocation2 + $0x3] sm:$0xff] }
 0x162   :  { %2641 = vmatprep.subr.mxu0 %v3210_v1  ;;  %2601 = vmatpush3.msra.mxu1 %v3818_v3 }
 0x163   :  { %2602 = vmatprep.mubr.msk.f32.mxu1 %vm3211_vm0, %v3210_v1  ;;  %2642 = vmatpush3.msra.mxu0 %v3825_v17  ;;  %v3849_v17 = vld [vmem:[%s4771_s2 + $0x270] sm:$0xff] }
 0x164   :  { %2643 = vmatprep.mubr.msk.f32.mxu0 %vm3211_vm0, %v3210_v1  ;;  %2603 = vmatmul.mubr.f32.vlgmr.msra.gmra.mxu1 %v4798_v13  ;;  %v4799_v13 = vmax.f32 %v3588_v59, 0.0  ;;  %v3883_v59 = vld [vmem:[%s4771_s2 + $0x258] sm:$0xff] }
 0x165   :  { %2644 = vmatmul.mubr.f32.vlgmr.msra.gmra.mxu0 %v516_v6  ;;  %2652 = vmatprep.subr.mxu1 %v3210_v1  ;;  %v3871_v6 = vld [vmem:[%s4771_s2 + $0x260] sm:$0xff] }
 0x166   :  { %2693 = vmatprep.subr.mxu0 %v3210_v1  ;;  %2653 = vmatpush3.msra.mxu1 %v3838_v8 }
 0x167   :  { %2694 = vmatpush3.msra.mxu0 %v3354_v22  ;;  %2654 = vmatprep.subr.mxu1 %v3210_v1  ;;  %v517_v22 = vld [vmem:[#allocation2 + $0xb] sm:$0xff] }
 0x168   :  { %2695 = vmatprep.subr.mxu0 %v3210_v1  ;;  %2605 = vmatprep.mubr.msk.f32.mxu1 %vm3211_vm0, %v3210_v1 }
 0x169   :  { %2646 = vmatprep.mubr.msk.f32.mxu0 %vm3211_vm0, %v3210_v1  ;;  %2655 = vmatpush3.msra.mxu1 %v3849_v17 }
 0x16a   :  { %2696 = vmatpush3.msra.mxu0 %v3368_v24  ;;  %2606 = vmatmul.mubr.f32.gmra.mxu1 %v4799_v13  ;;  %v415_v24 = vld [vmem:[#allocation2 + $0x12] sm:$0x1]  ;;  %v725_v13 = vld [vmem:[#allocation2 + $0x19] sm:$0xff] }
 0x16b   :  { %2647 = vmatmul.mubr.f32.gmra.mxu0 %v517_v22  ;;  %2656 = vmatprep.subr.mxu1 %v3210_v1  ;;  %v3894_v22 = vld [vmem:[%s4771_s2 + $0x250] sm:$0xff] }
 0x16c   :  { %2697 = vmatprep.subr.mxu0 %v3210_v1  ;;  %2657 = vmatpush3.msra.mxu1 %v3862_v57 }
 0x16d   :  { %2698 = vmatpush3.msra.mxu0 %v3382_v26  ;;  %2658 = vmatprep.subr.mxu1 %v3210_v1  ;;  %v518_v26 = vld [vmem:[#allocation2 + $0x13] sm:$0x1] }
 0x16e   :  { %2699 = vmatprep.subr.mxu0 %v3210_v1  ;;  %2608 = vmatprep.mubr.msk.f32.mxu1 %vm3211_vm0, %v3210_v1 }
 0x16f   :  { %2659 = vmatpush3.msra.mxu1 %v3871_v6  ;;  %2700 = vmatpush3.msra.mxu0 %v3396_v28  ;;  %v3902_v28 = vld [vmem:[%s4771_s2 + $0x248] sm:$0xff] }
 0x170   :  { %2609 = vmatmul.mubr.f32.gmra.mxu1 %v415_v24  ;;  %2660 = vmatprep.subr.mxu1 %v3210_v1 }
 0x171   :  { %2701 = vmatprep.subr.mxu0 %v3210_v1  ;;  %2649 = vmatprep.mubr.msk.f32.mxu0 %vm3211_vm0, %v3210_v1 }
 0x172   :  { %2661 = vmatpush3.msra.mxu1 %v3883_v59  ;;  %2702 = vmatpush3.msra.mxu0 %v3410_v30  ;;  %v3911_v30 = vld [vmem:[%s4771_s2 + $0x240] sm:$0xff] }
 0x173   :  { %2662 = vmatprep.subr.mxu1 %v3210_v1  ;;  %2650 = vmatmul.mubr.f32.gmra.mxu0 %v518_v26 }
 0x174   :  { %2703 = vmatprep.subr.mxu0 %v3210_v1  ;;  %2663 = vmatpush3.msra.mxu1 %v3894_v22 }
 0x175   :  { %2704 = vmatpush3.msra.mxu0 %v3424_v32  ;;  %2664 = vmatprep.subr.mxu1 %v3210_v1  ;;  %v3920_v32 = vld [vmem:[%s4771_s2 + $0x238] sm:$0xff] }
 0x176   :  { %2705 = vmatprep.subr.mxu0 %v3210_v1  ;;  %2665 = vmatpush3.msra.mxu1 %v3902_v28 }
 0x177   :  { %2706 = vmatpush3.msra.mxu0 %v3438_v34  ;;  %2666 = vmatprep.subr.mxu1 %v3210_v1  ;;  %v3929_v34 = vld [vmem:[%s4771_s2 + $0x230] sm:$0xff] }
 0x178   :  { %2707 = vmatprep.subr.mxu0 %v3210_v1  ;;  %2667 = vmatpush3.msra.mxu1 %v3911_v30 }
 0x179   :  { %2708 = vmatpush3.msra.mxu0 %v3452_v36  ;;  %2668 = vmatprep.subr.mxu1 %v3210_v1  ;;  %v3938_v36 = vld [vmem:[%s4771_s2 + $0x228] sm:$0xff] }
 0x17a   :  { %2709 = vmatprep.subr.mxu0 %v3210_v1  ;;  %2669 = vmatpush3.msra.mxu1 %v3920_v32 }
 0x17b   :  { %2710 = vmatpush3.msra.mxu0 %v3466_v38  ;;  %2670 = vmatprep.subr.mxu1 %v3210_v1  ;;  %v3947_v38 = vld [vmem:[%s4771_s2 + $0x220] sm:$0xff] }
 0x17c   :  { %2711 = vmatprep.subr.mxu0 %v3210_v1  ;;  %2671 = vmatpush3.msra.mxu1 %v3929_v34 }
 0x17d   :  { %2712 = vmatpush3.msra.mxu0 %v3480_v40  ;;  %2672 = vmatprep.subr.mxu1 %v3210_v1  ;;  %v3956_v40 = vld [vmem:[%s4771_s2 + $0x218] sm:$0xff] }
 0x17e   :  { %2713 = vmatprep.subr.mxu0 %v3210_v1  ;;  %2673 = vmatpush3.msra.mxu1 %v3938_v36 }
 0x17f   :  { %2714 = vmatpush3.msra.mxu0 %v3494_v42  ;;  %2674 = vmatprep.subr.mxu1 %v3210_v1  ;;  %v3965_v42 = vld [vmem:[%s4771_s2 + $0x210] sm:$0xff] }
 0x180   :  { %2715 = vmatprep.subr.mxu0 %v3210_v1  ;;  %2675 = vmatpush3.msra.mxu1 %v3947_v38 }
 0x181   :  { %2716 = vmatpush3.msra.mxu0 %v3508_v44  ;;  %2676 = vmatprep.subr.mxu1 %v3210_v1  ;;  %v3974_v44 = vld [vmem:[%s4771_s2 + $0x208] sm:$0xff] }
 0x182   :  { %2717 = vmatprep.subr.mxu0 %v3210_v1  ;;  %2677 = vmatpush3.msra.mxu1 %v3956_v40 }
 0x183   :  { %2718 = vmatpush3.msra.mxu0 %v3522_v46  ;;  %2678 = vmatprep.subr.mxu1 %v3210_v1  ;;  %v3983_v46 = vld [vmem:[%s4771_s2 + $0x200] sm:$0xff]  ;;  %s3212_s2 = smov [#allocation4]  }
 0x184   :  { %2719 = vmatprep.subr.mxu0 %v3210_v1  ;;  %2679 = vmatpush3.msra.mxu1 %v3965_v42  ;;  %s1991_s21 = sshll.u32 %s3212_s2, 4  ;;  %s1992_s21 = int_to_ptr.vmem [resolvable:$true] %s1991_s21 }
 0x185   :  { %2720 = vmatpush3.msra.mxu0 %v3534_v48  ;;  %2680 = vmatprep.subr.mxu1 %v3210_v1  ;;  %v619_v48 = vld [vmem:[#allocation2 + $0x4] sm:$0xff]  ;;  %s3188_s22 = scalar_lea.vmem %s1992_s21, 32  ;;  %p3193_p1 = scmp.lt.s32.totalorder %s1992_s21, %s1992_s21 }
 0x186   :  { %2721 = vmatprep.subr.mxu0 %v3210_v1  ;;  %2681 = vmatpush3.msra.mxu1 %v3974_v44  ;;  %p3189_p0 = scmp.ne.s32.totalorder %s1992_s21, %s3188_s22  ;;  %p3194_p2 = scmp.lt.s32.totalorder %s3188_s22, %s3188_s22 }
 0x187   :  { %2722 = vmatpush3.msra.mxu0 %v3546_v50  ;;  %2682 = vmatprep.subr.mxu1 %v3210_v1  ;;  %v620_v50 = vld [vmem:[#allocation2 + $0xc] sm:$0xff] }
 0x188   :  { %2723 = vmatprep.subr.mxu0 %v3210_v1  ;;  %2683 = vmatpush3.msra.mxu1 %v3983_v46  ;;  %p3195_p3 = por %p3194_p2, %p3193_p1 }
 0x189   :  { %2684 = vmatprep.mubr.msk.f32.mxu1 %vm3211_vm0, %v3210_v1  ;;  %2724 = vmatpush3.msra.mxu0 %v3560_v52  ;;  %v727_v52 = vld [vmem:[#allocation2 + $0x29] sm:$0x1] }
 0x18a   :  { %2725 = vmatprep.mubr.msk.f32.mxu0 %vm3211_vm0, %v3210_v1  ;;  %2685 = vmatmul.mubr.f32.vlgmr.msra.gmra.mxu1 %v619_v48  ;;  %v4177_v48 = vld [vmem:[%s4772_s3 + $0xf0] sm:$0xff]  ;;  %p3196_p4 = pnand %p3195_p3, %p3189_p0 }
 0x18b   :  { %2726 = vmatmul.mubr.f32.vlgmr.msra.gmra.mxu0 %v725_v13  ;;  %2734 = vmatprep.subr.mxu1 %v3210_v1 }
 0x18c   :  { %2775 = vmatprep.subr.mxu0 %v3210_v1  ;;  %2735 = vmatpush3.msra.mxu1 %v3359_v23  ;;  %v4800_v23 = vmax.f32 %v3590_v62, 0.0  ;;  %v1060_v62 = vld [vmem:[#allocation2 + $0x1c] sm:$0xff] }
 0x18d   :  { %2776 = vmatpush3.msra.mxu0 %v3604_v14  ;;  %2736 = vmatprep.subr.mxu1 %v3210_v1  ;;  %v1062_v14 = vld [vmem:[#allocation2 + $0x2c] sm:$0x1] }
 0x18e   :  { %2777 = vmatprep.subr.mxu0 %v3210_v1  ;;  %2687 = vmatprep.mubr.msk.f32.mxu1 %vm3211_vm0, %v3210_v1 }
 0x18f   :  { %2728 = vmatprep.mubr.msk.f32.mxu0 %vm3211_vm0, %v3210_v1  ;;  %2737 = vmatpush3.msra.mxu1 %v3373_v25  ;;  %v621_v25 = vld [vmem:[#allocation2 + $0x14] sm:$0x1] }
 0x190   :  { %2778 = vmatpush3.msra.mxu0 %v3614_v54  ;;  %2688 = vmatmul.mubr.f32.gmra.mxu1 %v620_v50 }
 0x191   :  { %2729 = vmatmul.mubr.f32.gmra.mxu0 %v4800_v23  ;;  %2738 = vmatprep.subr.mxu1 %v3210_v1  ;;  %v4184_v23 = vld [vmem:[%s4772_s3 + $0xe8] sm:$0xff] }
 0x192   :  { %2779 = vmatprep.subr.mxu0 %v3210_v1  ;;  %2739 = vmatpush3.msra.mxu1 %v3387_v27  ;;  %v722_v27 = vld [vmem:[#allocation2 + $0x18] sm:$0xff] }
 0x193   :  { %2780 = vmatpush3.msra.mxu0 %v3634_v58  ;;  %2740 = vmatprep.subr.mxu1 %v3210_v1 }
 0x194   :  { %2781 = vmatprep.subr.mxu0 %v3210_v1  ;;  %2690 = vmatprep.mubr.msk.f32.mxu1 %vm3211_vm0, %v3210_v1 }
 0x195   :  { %2731 = vmatprep.mubr.msk.f32.mxu0 %vm3211_vm0, %v3210_v1  ;;  %2741 = vmatpush3.msra.mxu1 %v3401_v29  ;;  %v888_v29 = vld [vmem:[#allocation2 + $0x1a] sm:$0xff] }
 0x196   :  { %2782 = vmatpush3.msra.mxu0 %v3646_v7  ;;  %2691 = vmatmul.mubr.f32.gmra.mxu1 %v621_v25  ;;  %v4191_v25 = vld [vmem:[%s4772_s3 + $0xe0] sm:$0xff] }
 0x197   :  { %2732 = vmatmul.mubr.f32.gmra.mxu0 %v727_v52  ;;  %2742 = vmatprep.subr.mxu1 %v3210_v1 }
 0x198   :  { %2783 = vmatprep.subr.mxu0 %v3210_v1  ;;  %2743 = vmatpush3.msra.mxu1 %v3415_v31  ;;  %v723_v31 = vld [vmem:[#allocation2 + $0x20] sm:$0xff] }
 0x199   :  { %2784 = vmatpush3.msra.mxu0 %v3666_v10  ;;  %2744 = vmatprep.subr.mxu1 %v3210_v1 }
 0x19a   :  { %2785 = vmatprep.subr.mxu0 %v3210_v1  ;;  %2745 = vmatpush3.msra.mxu1 %v3429_v33  ;;  %v889_v33 = vld [vmem:[#allocation2 + $0x22] sm:$0xff] }
 0x19b   :  { %2786 = vmatpush3.msra.mxu0 %v3678_v19  ;;  %2746 = vmatprep.subr.mxu1 %v3210_v1 }
 0x19c   :  { %2787 = vmatprep.subr.mxu0 %v3210_v1  ;;  %2747 = vmatpush3.msra.mxu1 %v3443_v35  ;;  %v724_v35 = vld [vmem:[#allocation2 + $0x28] sm:$0x1] }
 0x19d   :  { %2788 = vmatpush3.msra.mxu0 %v3692_v21  ;;  %2748 = vmatprep.subr.mxu1 %v3210_v1 }
 0x19e   :  { %2789 = vmatprep.subr.mxu0 %v3210_v1  ;;  %2749 = vmatpush3.msra.mxu1 %v3457_v37  ;;  %v890_v37 = vld [vmem:[#allocation2 + $0x2a] sm:$0x1] }
 0x19f   :  { %2790 = vmatpush3.msra.mxu0 %v3706_v60  ;;  %2750 = vmatprep.subr.mxu1 %v3210_v1 }
 0x1a0   :  { %2791 = vmatprep.subr.mxu0 %v3210_v1  ;;  %2751 = vmatpush3.msra.mxu1 %v3471_v39  ;;  %v4801_v39 = vld [vmem:[#allocation8_spill] sm:$0xff] }
 0x1a1   :  { %2792 = vmatpush3.msra.mxu0 %v3720_v4  ;;  %2752 = vmatprep.subr.mxu1 %v3210_v1 }
 0x1a2   :  { %2793 = vmatprep.subr.mxu0 %v3210_v1  ;;  %2753 = vmatpush3.msra.mxu1 %v3485_v41  ;;  %v4802_v41 = vld [vmem:[#allocation9_spill] sm:$0xff] }
 0x1a3   :  { %2794 = vmatpush3.msra.mxu0 %v3734_v16  ;;  %2754 = vmatprep.subr.mxu1 %v3210_v1 }
 0x1a4   :  { %2795 = vmatprep.subr.mxu0 %v3210_v1  ;;  %2755 = vmatpush3.msra.mxu1 %v3499_v43  ;;  %v4803_v43 = vld [vmem:[#allocation10_spill] sm:$0xff] }
 0x1a5   :  { %2796 = vmatpush3.msra.mxu0 %v3748_v61  ;;  %2756 = vmatprep.subr.mxu1 %v3210_v1 }
 0x1a6   :  { %2797 = vmatprep.subr.mxu0 %v3210_v1  ;;  %2757 = vmatpush3.msra.mxu1 %v3513_v45  ;;  %v4804_v45 = vld [vmem:[#allocation11_spill] sm:$0xff] }
 0x1a7   :  { %2798 = vmatpush3.msra.mxu0 %v3762_v12  ;;  %2758 = vmatprep.subr.mxu1 %v3210_v1 }
 0x1a8   :  { %2799 = vmatprep.subr.mxu0 %v3210_v1  ;;  %2759 = vmatpush3.msra.mxu1 %v3527_v47  ;;  %v4805_v47 = vld [vmem:[#allocation12_spill] sm:$0xff] }
 0x1a9   :  { %2800 = vmatpush3.msra.mxu0 %v3776_v5  ;;  %2760 = vmatprep.subr.mxu1 %v3210_v1  ;;  %v976_v5 = vld [vmem:[#allocation2 + $0x2b] sm:$0x1] }
 0x1aa   :  { %2801 = vmatprep.subr.mxu0 %v3210_v1  ;;  %2761 = vmatpush3.msra.mxu1 %v3539_v49  ;;  %v4806_v49 = vld [vmem:[#allocation13_spill] sm:$0xff] }
 0x1ab   :  { %2802 = vmatpush3.msra.mxu0 %v3790_v0  ;;  %2762 = vmatprep.subr.mxu1 %v3210_v1  ;;  %v975_v0 = vld [vmem:[#allocation2 + $0x23] sm:$0xff] }
 0x1ac   :  { %2803 = vmatprep.subr.mxu0 %v3210_v1  ;;  %2763 = vmatpush3.msra.mxu1 %v3551_v51  ;;  %v4807_v51 = vld [vmem:[#allocation14_spill] sm:$0xff] }
 0x1ad   :  { %2804 = vmatpush3.msra.mxu0 %v3804_v18  ;;  %2764 = vmatprep.subr.mxu1 %v3210_v1 }
 0x1ae   :  { %2805 = vmatprep.subr.mxu0 %v3210_v1  ;;  %2765 = vmatpush3.msra.mxu1 %v3565_v53  ;;  %v4808_v53 = vld [vmem:[#allocation15_spill] sm:$0xff] }
 0x1af   :  { %2766 = vmatprep.mubr.msk.f32.mxu1 %vm3211_vm0, %v3210_v1  ;;  %2806 = vmatpush3.msra.mxu0 %v3818_v3  ;;  %v1061_v3 = vld [vmem:[#allocation2 + $0x24] sm:$0xff] }
 0x1b0   :  { %2807 = vmatprep.mubr.msk.f32.mxu0 %vm3211_vm0, %v3210_v1  ;;  %2767 = vmatmul.mubr.f32.vlgmr.msra.gmra.mxu1 %v722_v27 }
 0x1b1   :  { %2808 = vmatmul.mubr.f32.vlgmr.msra.gmra.mxu0 %v888_v29  ;;  %2816 = vmatprep.subr.mxu1 %v3210_v1 }
 0x1b2   :  { %2857 = vmatprep.subr.mxu0 %v3210_v1  ;;  %2817 = vmatpush3.msra.mxu1 %v3609_v15 }
 0x1b3   :  { %2858 = vmatpush3.msra.mxu0 %v3838_v8  ;;  %2818 = vmatprep.subr.mxu1 %v3210_v1  ;;  %v974_v8 = vld [vmem:[#allocation2 + $0x1b] sm:$0xff] }
 0x1b4   :  { %2859 = vmatprep.subr.mxu0 %v3210_v1  ;;  %2769 = vmatprep.mubr.msk.f32.mxu1 %vm3211_vm0, %v3210_v1 }
 0x1b5   :  { %2810 = vmatprep.mubr.msk.f32.mxu0 %vm3211_vm0, %v3210_v1  ;;  %2819 = vmatpush3.msra.mxu1 %v3619_v56 }
 0x1b6   :  { %2860 = vmatpush3.msra.mxu0 %v3849_v17  ;;  %2770 = vmatmul.mubr.f32.gmra.mxu1 %v723_v31  ;;  %v4201_v31 = vld [vmem:[%s4772_s3 + $0x78] sm:$0xff] }
 0x1b7   :  { %2811 = vmatmul.mubr.f32.gmra.mxu0 %v889_v33  ;;  %2820 = vmatprep.subr.mxu1 %v3210_v1  ;;  %v4207_v33 = vld [vmem:[%s4772_s3 + $0xd8] sm:$0xff] }
 0x1b8   :  { %2861 = vmatprep.subr.mxu0 %v3210_v1  ;;  %2821 = vmatpush3.msra.mxu1 %v3639_v2 }
 0x1b9   :  { %2862 = vmatpush3.msra.mxu0 %v3862_v57  ;;  %2822 = vmatprep.subr.mxu1 %v3210_v1 }
 0x1ba   :  { %2863 = vmatprep.subr.mxu0 %v3210_v1  ;;  %2772 = vmatprep.mubr.msk.f32.mxu1 %vm3211_vm0, %v3210_v1 }
 0x1bb   :  { %2813 = vmatprep.mubr.msk.f32.mxu0 %vm3211_vm0, %v3210_v1  ;;  %2823 = vmatpush3.msra.mxu1 %v3651_v9 }
 0x1bc   :  { %2864 = vmatpush3.msra.mxu0 %v3871_v6  ;;  %2773 = vmatmul.mubr.f32.gmra.mxu1 %v724_v35 }
 0x1bd   :  { %2814 = vmatmul.mubr.f32.gmra.mxu0 %v890_v37  ;;  %2824 = vmatprep.subr.mxu1 %v3210_v1 }
 0x1be   :  { %2865 = vmatprep.subr.mxu0 %v3210_v1  ;;  %2825 = vmatpush3.msra.mxu1 %v3671_v11 }
 0x1bf   :  { %2866 = vmatpush3.msra.mxu0 %v3883_v59  ;;  %2826 = vmatprep.subr.mxu1 %v3210_v1 }
 0x1c0   :  { %2867 = vmatprep.subr.mxu0 %v3210_v1  ;;  %2827 = vmatpush3.msra.mxu1 %v3683_v20 }
 0x1c1   :  { %2868 = vmatpush3.msra.mxu0 %v3894_v22  ;;  %2828 = vmatprep.subr.mxu1 %v3210_v1 }
 0x1c2   :  { %2869 = vmatprep.subr.mxu0 %v3210_v1  ;;  %2829 = vmatpush3.msra.mxu1 %v3697_v55 }
 0x1c3   :  { %2870 = vmatpush3.msra.mxu0 %v3902_v28  ;;  %2830 = vmatprep.subr.mxu1 %v3210_v1 }
 0x1c4   :  { %2871 = vmatprep.subr.mxu0 %v3210_v1  ;;  %2831 = vmatpush3.msra.mxu1 %v3711_v63 }
 0x1c5   :  { %2872 = vmatpush3.msra.mxu0 %v3911_v30  ;;  %2832 = vmatprep.subr.mxu1 %v3210_v1 }
 0x1c6   :  { %2873 = vmatprep.subr.mxu0 %v3210_v1  ;;  %2833 = vmatpush3.msra.mxu1 %v4801_v39 }
 0x1c7   :  { %2874 = vmatpush3.msra.mxu0 %v3920_v32  ;;  %2834 = vmatprep.subr.mxu1 %v3210_v1 }
 0x1c8   :  { %2875 = vmatprep.subr.mxu0 %v3210_v1  ;;  %2835 = vmatpush3.msra.mxu1 %v4802_v41  ;;  %v4217_v41 = vld [vmem:[%s4772_s3 + $0x70] sm:$0xff] }
 0x1c9   :  { %2876 = vmatpush3.msra.mxu0 %v3929_v34  ;;  %2836 = vmatprep.subr.mxu1 %v3210_v1 }
 0x1ca   :  { %2877 = vmatprep.subr.mxu0 %v3210_v1  ;;  %2837 = vmatpush3.msra.mxu1 %v4803_v43  ;;  %v4223_v43 = vld [vmem:[%s4772_s3 + $0xd0] sm:$0xff] }
 0x1cb   :  { %2878 = vmatpush3.msra.mxu0 %v3938_v36  ;;  %2838 = vmatprep.subr.mxu1 %v3210_v1 }
 0x1cc   :  { %2879 = vmatprep.subr.mxu0 %v3210_v1  ;;  %2839 = vmatpush3.msra.mxu1 %v4804_v45  ;;  %v4231_v45 = vld [vmem:[%s4772_s3 + $0x68] sm:$0xff] }
 0x1cd   :  { %2880 = vmatpush3.msra.mxu0 %v3947_v38  ;;  %2840 = vmatprep.subr.mxu1 %v3210_v1 }
 0x1ce   :  { %2881 = vmatprep.subr.mxu0 %v3210_v1  ;;  %2841 = vmatpush3.msra.mxu1 %v4805_v47  ;;  %v4237_v47 = vld [vmem:[%s4772_s3 + $0xc8] sm:$0xff] }
 0x1cf   :  { %2882 = vmatpush3.msra.mxu0 %v3956_v40  ;;  %2842 = vmatprep.subr.mxu1 %v3210_v1  ;;  %v4166_v40 = vld [vmem:[%s4772_s3 + $0xf8] sm:$0xff] }
 0x1d0   :  { %2883 = vmatprep.subr.mxu0 %v3210_v1  ;;  %2843 = vmatpush3.msra.mxu1 %v4806_v49 }
 0x1d1   :  { %2884 = vmatpush3.msra.mxu0 %v3965_v42  ;;  %2844 = vmatprep.subr.mxu1 %v3210_v1 }
 0x1d2   :  { %2885 = vmatprep.subr.mxu0 %v3210_v1  ;;  %2845 = vmatpush3.msra.mxu1 %v4807_v51 }
 0x1d3   :  { %2886 = vmatpush3.msra.mxu0 %v3974_v44  ;;  %2846 = vmatprep.subr.mxu1 %v3210_v1 }
 0x1d4   :  { %2887 = vmatprep.subr.mxu0 %v3210_v1  ;;  %2847 = vmatpush3.msra.mxu1 %v4808_v53 }
 0x1d5   :  { %2848 = vmatprep.mubr.msk.f32.mxu1 %vm3211_vm0, %v3210_v1  ;;  %2888 = vmatpush3.msra.mxu0 %v3983_v46 }
 0x1d6   :  { %2889 = vmatprep.mubr.msk.f32.mxu0 %vm3211_vm0, %v3210_v1  ;;  %2849 = vmatmul.mubr.f32.vlgmr.msra.gmra.mxu1 %v974_v8  ;;  %v4249_v8 = vld [vmem:[%s4772_s3 + $0x60] sm:$0xff] }
 0x1d7   :  { %2890 = vmatmul.mubr.f32.vlgmr.msra.gmra.mxu0 %v1060_v62  ;;  %2851 = vmatprep.mubr.msk.f32.mxu1 %vm3211_vm0, %v3210_v1  ;;  %v4255_v62 = vld [vmem:[%s4772_s3 + $0xc0] sm:$0xff] }
 0x1d8   :  { %2892 = vmatprep.mubr.msk.f32.mxu0 %vm3211_vm0, %v3210_v1  ;;  %2898 = vmatprep.subr.mxu1 %v3210_v1 }
 0x1d9   :  { %2939 = vmatprep.subr.mxu0 %v3210_v1  ;;  %2899 = vmatpush3.msra.mxu1 %v4166_v40 }
 0x1da   :  { %2852 = vmatmul.mubr.f32.gmra.mxu1 %v975_v0  ;;  %2900 = vmatprep.subr.mxu1 %v3210_v1 }
 0x1db   :  { %2893 = vmatmul.mubr.f32.gmra.mxu0 %v1061_v3  ;;  %2854 = vmatprep.mubr.msk.f32.mxu1 %vm3211_vm0, %v3210_v1 }
 0x1dc   :  { %2895 = vmatprep.mubr.msk.f32.mxu0 %vm3211_vm0, %v3210_v1  ;;  %2901 = vmatpush3.msra.mxu1 %v4177_v48 }
 0x1dd   :  { %2902 = vmatprep.subr.mxu1 %v3210_v1  ;;  %2940 = vmatpush3.msra.mxu0 %v4201_v31 }
 0x1de   :  { %2855 = vmatmul.mubr.f32.gmra.mxu1 %v976_v5  ;;  %2941 = vmatprep.subr.mxu0 %v3210_v1 }
 0x1df   :  { %2896 = vmatmul.mubr.f32.gmra.mxu0 %v1062_v14  ;;  %2930 = vmatprep.mubr.msk.f32.mxu1 %vm3211_vm0, %v3210_v1  ;;  %v4265_v14 = vld [vmem:[%s4772_s3 + $0x58] sm:$0xff] }
 0x1e0   :  { %2971 = vmatprep.mubr.msk.f32.mxu0 %vm3211_vm0, %v3210_v1  ;;  %2903 = vmatpush3.msra.mxu1 %v4184_v23 }
 0x1e1   :  { %2904 = vmatprep.subr.mxu1 %v3210_v1  ;;  %2942 = vmatpush3.msra.mxu0 %v4217_v41 }
 0x1e2   :  { %2905 = vmatpush3.msra.mxu1 %v4191_v25  ;;  %2943 = vmatprep.subr.mxu0 %v3210_v1 }
 0x1e3   :  { %2906 = vmatprep.subr.mxu1 %v3210_v1  ;;  %2944 = vmatpush3.msra.mxu0 %v4231_v45 }
 0x1e4   :  { %2907 = vmatpush3.msra.mxu1 %v4207_v33  ;;  %2945 = vmatprep.subr.mxu0 %v3210_v1 }
 0x1e5   :  { %2908 = vmatprep.subr.mxu1 %v3210_v1  ;;  %2946 = vmatpush3.msra.mxu0 %v4249_v8 }
 0x1e6   :  { %2909 = vmatpush3.msra.mxu1 %v4223_v43  ;;  %2947 = vmatprep.subr.mxu0 %v3210_v1 }
 0x1e7   :  { %2910 = vmatprep.subr.mxu1 %v3210_v1  ;;  %2948 = vmatpush3.msra.mxu0 %v4265_v14 }
 0x1e8   :  { %2911 = vmatpush3.msra.mxu1 %v4237_v47  ;;  %2949 = vmatprep.subr.mxu0 %v3210_v1 }
 0x1e9   :  { %2912 = vmatprep.subr.mxu1 %v3210_v1 }
 0x1ea   :  { %2913 = vmatpush3.msra.mxu1 %v4255_v62 }
 0x1eb   :  { %2914 = vmatprep.subr.mxu1 %v3210_v1 }
 0x1ff   :  { %v319_v15 = vpop.f32.mrf.mxu1 }
 0x200   :  { %v399_v54 = vpop.f32.mrf.mxu0 }
 0x201   :  { %v400_v56 = vadd.f32 %v399_v54, %v319_v15  ;;  %v2522_v58 = vpop.f32.mrf.mxu1  ;;  %v4271_v15 = vld [vmem:[%s4772_s3 + $0xb8] sm:$0xff] }
 0x202   :  { %v2563_v2 = vpop.f32.mrf.mxu0  ;;  %2915 = vmatpush3.msra.mxu1 %v4271_v15  ;;  %v4287_v58 = vld [vmem:[%s4772_s3 + $0xb0] sm:$0xff] }
 0x203   :  { %2916 = vmatprep.subr.mxu1 %v3210_v1  ;;  %v4295_v2 = vld [vmem:[%s4772_s3 + $0x48] sm:$0xff] }
 0x204   :  { %2917 = vmatpush3.msra.mxu1 %v4287_v58 }
 0x205   :  { %v324_v7 = vpop.f32.mrf.mxu1  ;;  %2918 = vmatprep.subr.mxu1 %v3210_v1 }
 0x206   :  { %v404_v9 = vpop.f32.mrf.mxu0 }
 0x207   :  { %v405_v10 = vadd.f32 %v404_v9, %v324_v7  ;;  %v2525_v11 = vpop.f32.mrf.mxu1  ;;  %v4301_v7 = vld [vmem:[%s4772_s3 + $0xa8] sm:$0xff]  ;;  %v4309_v9 = vld [vmem:[%s4772_s3 + $0x40] sm:$0xff] }
 0x208   :  { %v2566_v19 = vpop.f32.mrf.mxu0  ;;  %2919 = vmatpush3.msra.mxu1 %v4301_v7  ;;  %v4323_v11 = vld [vmem:[%s4772_s3 + $0x38] sm:$0xff] }
 0x209   :  { %2920 = vmatprep.subr.mxu1 %v3210_v1  ;;  %v4329_v19 = vld [vmem:[%s4772_s3 + $0x98] sm:$0xff] }
 0x20b   :  { %v329_v20 = vpop.f32.mrf.mxu1 }
 0x20c   :  { %v409_v21 = vpop.f32.mrf.mxu0 }
 0x20d   :  { %v410_v55 = vadd.f32 %v409_v21, %v329_v20  ;;  %v2528_v60 = vpop.f32.mrf.mxu1  ;;  %v4337_v20 = vld [vmem:[%s4772_s3 + $0x30] sm:$0xff] }
 0x20e   :  { %v2569_v63 = vpop.f32.mrf.mxu0  ;;  %v4343_v21 = vld [vmem:[%s4772_s3 + $0x90] sm:$0xff]  ;;  %v4357_v60 = vld [vmem:[%s4772_s3 + $0x88] sm:$0xff] }
 0x20f   :  { %v4365_v63 = vld [vmem:[%s4772_s3 + $0x20] sm:$0xff] }
 0x224   :  { %v499_v4 = vpop.f32.mrf.mxu1 }
 0x225   :  { %v602_v16 = vpop.f32.mrf.mxu0  ;;  %v513_v17 = vadd.f32 %v499_v4, %v400_v56  ;;  %v4281_v56 = vld [vmem:[%s4772_s3 + $0x50] sm:$0xff]  ;;  %v4371_v4 = vld [vmem:[%s4772_s3 + $0x80] sm:$0xff] }
 0x226   :  { %v2604_v61 = vpop.f32.mrf.mxu1  ;;  %2950 = vmatpush3.msra.mxu0 %v4281_v56 }
 0x227   :  { %v2645_v12 = vpop.f32.mrf.mxu0  ;;  %v616_v18 = vadd.f32 %v602_v16, %v513_v17  ;;  %2951 = vmatprep.subr.mxu0 %v3210_v1  ;;  %v4379_v16 = vld [vmem:[%s4772_s3 + $0x18] sm:$0xff]  ;;  %v4386_v17 = vld [vmem:[%s4772_s3 + $0x10] sm:$0xff]  ;;  %v4392_v61 = vld [vmem:[%s4772_s3 + $0x8] sm:$0xff] }
 0x228   :  { %2952 = vmatpush3.msra.mxu0 %v4295_v2  ;;  %v4399_v12 = vld [vmem:[%s4772_s3] sm:$0xff] }
 0x229   :  { %2953 = vmatprep.subr.mxu0 %v3210_v1 }
 0x22a   :  { %v504_v57 = vpop.f32.mrf.mxu1  ;;  %2954 = vmatpush3.msra.mxu0 %v4309_v9 }
 0x22b   :  { %v607_v6 = vpop.f32.mrf.mxu0  ;;  %v514_v24 = vadd.f32 %v504_v57, %v405_v10  ;;  %v4315_v10 = vld [vmem:[%s4772_s3 + $0xa0] sm:$0xff]  ;;  %2955 = vmatprep.subr.mxu0 %v3210_v1 }
 0x22c   :  { %v2607_v59 = vpop.f32.mrf.mxu1  ;;  %2921 = vmatpush3.msra.mxu1 %v4315_v10  ;;  %2956 = vmatpush3.msra.mxu0 %v4323_v11 }
 0x22d   :  { %v2648_v26 = vpop.f32.mrf.mxu0  ;;  %v617_v22 = vadd.f32 %v607_v6, %v514_v24  ;;  %2922 = vmatprep.subr.mxu1 %v3210_v1  ;;  %2957 = vmatprep.subr.mxu0 %v3210_v1 }
 0x22e   :  { %2923 = vmatpush3.msra.mxu1 %v4329_v19  ;;  %2958 = vmatpush3.msra.mxu0 %v4337_v20 }
 0x22f   :  { %2924 = vmatprep.subr.mxu1 %v3210_v1  ;;  %2959 = vmatprep.subr.mxu0 %v3210_v1 }
 0x230   :  { %v509_v28 = vpop.f32.mrf.mxu1  ;;  %2925 = vmatpush3.msra.mxu1 %v4343_v21 }
 0x231   :  { %v515_v30 = vadd.f32 %v509_v28, %v410_v55  ;;  %v4351_v55 = vld [vmem:[%s4772_s3 + $0x28] sm:$0xff]  ;;  %2926 = vmatprep.subr.mxu1 %v3210_v1 }
 0x232   :  { %v2610_v32 = vpop.f32.mrf.mxu1  ;;  %2960 = vmatpush3.msra.mxu0 %v4351_v55  ;;  %2927 = vmatpush3.msra.mxu1 %v4357_v60 }
 0x233   :  { %v612_v34 = vpop.f32.mrf.mxu0  ;;  %2961 = vmatprep.subr.mxu0 %v3210_v1  ;;  %2928 = vmatprep.subr.mxu1 %v3210_v1 }
 0x234   :  { %v618_v36 = vadd.f32 %v612_v34, %v515_v30  ;;  %2962 = vmatpush3.msra.mxu0 %v4365_v63  ;;  %2929 = vmatpush3.msra.mxu1 %v4371_v4 }
 0x235   :  { %v2651_v38 = vpop.f32.mrf.mxu0  ;;  %2963 = vmatprep.subr.mxu0 %v3210_v1  ;;  %2980 = vmatprep.subr.mxu1 %v3210_v1 }
 0x236   :  { %2964 = vmatpush3.msra.mxu0 %v4379_v16 }
 0x237   :  { %2965 = vmatprep.subr.mxu0 %v3210_v1 }
 0x238   :  { %2966 = vmatpush3.msra.mxu0 %v4386_v17 }
 0x239   :  { %2967 = vmatprep.subr.mxu0 %v3210_v1 }
 0x23a   :  { %2968 = vmatpush3.msra.mxu0 %v4392_v61 }
 0x23b   :  { %2969 = vmatprep.subr.mxu0 %v3210_v1 }
 0x23c   :  { %2970 = vmatpush3.msra.mxu0 %v4399_v12 }
 0x23d   :  { %3021 = vmatprep.subr.mxu0 %v3210_v1 }
 0x24a   :  { %v705_v42 = vpop.f32.mrf.mxu1 }
 0x24b   :  { %v4168_v44 = vpop.f32.mrf.mxu0  ;;  %v4171_v46 = vadd.f32 %v705_v42, %v616_v18 }
 0x24c   :  { %v2686_v13 = vpop.f32.mrf.mxu1 }
 0x24d   :  { %v2727_v50 = vpop.f32.mrf.mxu0 }
 0x250   :  { %v710_v52 = vpop.f32.mrf.mxu1 }
 0x251   :  { %v4193_v27 = vpop.f32.mrf.mxu0  ;;  %v4196_v29 = vadd.f32 %v710_v52, %v617_v22 }
 0x252   :  { %v2689_v35 = vpop.f32.mrf.mxu1 }
 0x253   :  { %v2730_v37 = vpop.f32.mrf.mxu0  ;;  %v1146_v39 = vadd.f32 %v4196_v29, %v4171_v46 }
 0x256   :  { %v715_v49 = vpop.f32.mrf.mxu1 }
 0x257   :  { %v4239_v51 = vpop.f32.mrf.mxu0  ;;  %v4243_v53 = vadd.f32 %v715_v49, %v618_v36 }
 0x258   :  { %v2692_v3 = vpop.f32.mrf.mxu1 }
 0x259   :  { %v2733_v0 = vpop.f32.mrf.mxu0  ;;  %v1148_v5 = vsel %vm1147_vm2, %v4243_v53, 0.0 }
 0x25a   :  { %v4273_v54 = vadd.f32 %v1148_v5, %v1146_v39 }
 0x270   :  { %v874_v18 = vpop.f32.mrf.mxu1 }
 0x271   :  { %v957_v57 = vpop.f32.mrf.mxu0  ;;  %v875_v38 = vadd.f32 %v874_v18, %v4168_v44 }
 0x272   :  { %v2768_v6 = vpop.f32.mrf.mxu1 }
 0x273   :  { %v2809_v24 = vpop.f32.mrf.mxu0  ;;  %v971_v52 = vadd.f32 %v957_v57, %v875_v38 }
 0x274   :  { %v1150_v24 = vrot.slane %v4273_v54, 4 }
 0x276   :  { %v879_v59 = vpop.f32.mrf.mxu1  ;;  %v1151_v38 = vadd.f32 %v1150_v24, %v4273_v54 }
 0x277   :  { %v962_v26 = vpop.f32.mrf.mxu0  ;;  %v880_v42 = vadd.f32 %v879_v59, %v4193_v27 }
 0x278   :  { %v2771_v22 = vpop.f32.mrf.mxu1 }
 0x279   :  { %v2812_v28 = vpop.f32.mrf.mxu0  ;;  %v972_v39 = vadd.f32 %v962_v26, %v880_v42 }
 0x27c   :  { %v884_v30 = vpop.f32.mrf.mxu1 }
 0x27d   :  { %v967_v32 = vpop.f32.mrf.mxu0  ;;  %v885_v49 = vadd.f32 %v884_v30, %v4239_v51 }
 0x27e   :  { %v2774_v34 = vpop.f32.mrf.mxu1 }
 0x27f   :  { %v2815_v36 = vpop.f32.mrf.mxu0  ;;  %v973_v34 = vadd.f32 %v967_v32, %v885_v49 }
 0x296   :  { %v1043_v13 = vpop.f32.mrf.mxu1 }
 0x297   :  { %v1129_v50 = vpop.f32.mrf.mxu0  ;;  %v1057_v0 = vadd.f32 %v1043_v13, %v971_v52  ;;  %v1152_v13 = vrot.slane %v1151_v38, 2 }
 0x298   :  { %v2850_v35 = vpop.f32.mrf.mxu1 }
 0x299   :  { %v2891_v37 = vpop.f32.mrf.mxu0  ;;  %v1143_v44 = vadd.f32 %v1129_v50, %v1057_v0 }
 0x29a   :  { %v1048_v3 = vpop.f32.mrf.mxu1  ;;  %v1153_v37 = vadd.f32 %v1152_v13, %v1151_v38 }
 0x29b   :  { %v1134_v5 = vpop.f32.mrf.mxu0  ;;  %v1058_v6 = vadd.f32 %v1048_v3, %v972_v39 }
 0x29c   :  { %v2853_v22 = vpop.f32.mrf.mxu1  ;;  %v1154_v32 = vrot.slane %v1153_v37, 1 }
 0x29d   :  { %v2894_v28 = vpop.f32.mrf.mxu0  ;;  %v1144_v18 = vadd.f32 %v1134_v5, %v1058_v6 }
 0x29e   :  { %v1053_v27 = vpop.f32.mrf.mxu1  ;;  %v1155_v0 = vadd.f32 %v1154_v32, %v1153_v37 }
 0x29f   :  { %v1139_v59 = vpop.f32.mrf.mxu0  ;;  %v1156_v36 = vadd.f32 %v1144_v18, %v1143_v44  ;;  %v1059_v57 = vadd.f32 %v1053_v27, %v973_v34 }
 0x2a0   :  { %v2856_v26 = vpop.f32.mrf.mxu1 }
 0x2a1   :  { %v2897_v42 = vpop.f32.mrf.mxu0  ;;  %v1145_v51 = vadd.f32 %v1139_v59, %v1059_v57 }
 0x2a3   :  { %v1157_v30 = vsel %vm1147_vm2, %v1145_v51, 0.0 }
 0x2a4   :  { %v1158_v52 = vadd.f32 %v1157_v30, %v1156_v36 }
 0x2a6   :  { %v1159_v35 = vrot.slane %v1158_v52, 4 }
 0x2a8   :  { %v1160_v39 = vadd.f32 %v1159_v35, %v1158_v52 }
 0x2aa   :  { %v1161_v3 = vrot.slane %v1160_v39, 2 }
 0x2ac   :  { %v1162_v50 = vadd.f32 %v1161_v3, %v1160_v39 }
 0x2ae   :  { %v1163_v49 = vrot.slane %v1162_v50, 1 }
 0x2b0   :  { %v1164_v5 = vadd.f32 %v1163_v49, %v1162_v50 }
 0x2b2   :  { %v1165_v6 = vadd.f32 %v1164_v5, %v1155_v0 }
 0x2b4   :  { %v1166_v22 = vmul.f32 0.029411765, %v1165_v6 }
 0x2b6   :  { %v1167_v54 = vsub.f32 %v4171_v46, %v1166_v22  ;;  %v1168_v24 = vsub.f32 %v4196_v29, %v1166_v22  ;;  %v1169_v28 = vsub.f32 %v4243_v53, %v1166_v22  ;;  %v1170_v34 = vsub.f32 %v1143_v44, %v1166_v22 }
 0x2b7   :  { %v1171_v27 = vsub.f32 %v1144_v18, %v1166_v22  ;;  %v1172_v59 = vsub.f32 %v1145_v51, %v1166_v22 }
 0x2b8   :  { %v1173_v36 = vmul.f32 %v1167_v54, %v1167_v54  ;;  %v1174_v57 = vmul.f32 %v1168_v24, %v1168_v24  ;;  %v1175_v38 = vmul.f32 %v1169_v28, %v1169_v28  ;;  %v1185_v26 = vmul.f32 %v1170_v34, %v1170_v34 }
 0x2b9   :  { %v1186_v42 = vmul.f32 %v1171_v27, %v1171_v27  ;;  %v1187_v30 = vmul.f32 %v1172_v59, %v1172_v59 }
 0x2ba   :  { %v1176_v13 = vadd.f32 %v1174_v57, %v1173_v36  ;;  %v1177_v52 = vsel %vm1147_vm2, %v1175_v38, 0.0  ;;  %v26_v38 = vld [vmem:[%s4774_s5 + $0x2] sm:$0x1] }
 0x2bb   :  { %v1188_v35 = vadd.f32 %v1186_v42, %v1185_v26  ;;  %v1189_v37 = vsel %vm1147_vm2, %v1187_v30, 0.0  ;;  %v4809_v30 = vld [vmem:[#allocation7_spill] sm:$0xff] }
 0x2bc   :  { %v1178_v46 = vadd.f32 %v1177_v52, %v1176_v13  ;;  %v2064_v52 = vld [vmem:[%s4774_s5 + $0x3] ss:$0 sm:$0xff] }
 0x2bd   :  { %v1190_v39 = vadd.f32 %v1189_v37, %v1188_v35 }
 0x2be   :  { %v1179_v29 = vrot.slane %v1178_v46, 4 }
 0x2bf   :  { %v1191_v3 = vrot.slane %v1190_v39, 4 }
 0x2c0   :  { %v1180_v53 = vadd.f32 %v1179_v29, %v1178_v46 }
 0x2c1   :  { %v1192_v44 = vadd.f32 %v1191_v3, %v1190_v39 }
 0x2c2   :  { %v1181_v18 = vrot.slane %v1180_v53, 2 }
 0x2c3   :  { %v1193_v51 = vrot.slane %v1192_v44, 2 }
 0x2c4   :  { %v1182_v32 = vadd.f32 %v1181_v18, %v1180_v53 }
 0x2c5   :  { %v1194_v50 = vadd.f32 %v1193_v51, %v1192_v44 }
 0x2c6   :  { %v1183_v49 = vrot.slane %v1182_v32, 1 }
 0x2c7   :  { %v1195_v0 = vrot.slane %v1194_v50, 1 }
 0x2c8   :  { %v1184_v5 = vadd.f32 %v1183_v49, %v1182_v32 }
 0x2c9   :  { %v1196_v6 = vadd.f32 %v1195_v0, %v1194_v50 }
 0x2cb   :  { %v1197_v22 = vadd.f32 %v1196_v6, %v1184_v5 }
 0x2cd   :  { %v1198_v36 = vmul.f32 0.029411765, %v1197_v22 }
 0x2cf   :  { %v1199_v57 = vadd.f32 1e-05, %v1198_v36 }
 0x2d1   :  { %3184 = vrsqrt.f32 %v1199_v57  ;;  %v4468_v57 = vld [vmem:[%s4772_s3 + $0x158] sm:$0xff] }
 0x2de   :  { %v3185_v26 = vpop.eup %3184 }
 0x2df   :  { %v1201_v42 = vmul.f32 %v3185_v26, %v26_v38  ;;  %v4480_v26 = vld [vmem:[%s4772_s3 + $0x150] sm:$0xff] }
 0x2e1   :  { %v1205_v13 = vrot.slane %v1201_v42, %v4809_v30 }
 0x2e3   :  { %v1206_v35 = vmul.f32 %v1205_v13, %v1167_v54  ;;  %v1207_v37 = vmul.f32 %v1205_v13, %v1168_v24  ;;  %v1208_v46 = vmul.f32 %v1205_v13, %v1169_v28  ;;  %v1219_v39 = vmul.f32 %v1205_v13, %v1170_v34  ;;  %v4431_v54 = vld [vmem:[%s4772_s3 + $0x178] sm:$0xff]  ;;  %v4439_v34 = vld [vmem:[%s4772_s3 + $0x170] sm:$0xff] }
 0x2e4   :  { %v1220_v29 = vmul.f32 %v1205_v13, %v1171_v27  ;;  %v1221_v3 = vmul.f32 %v1205_v13, %v1172_v59  ;;  %v4450_v27 = vld [vmem:[%s4772_s3 + $0x168] sm:$0xff]  ;;  %v4457_v59 = vld [vmem:[%s4772_s3 + $0x160] sm:$0xff] }
 0x2e5   :  { %v1213_v53 = vadd.f32 %v2064_v52, %v1206_v35  ;;  %v1214_v44 = vadd.f32 %v2064_v52, %v1207_v37  ;;  %v1215_v18 = vadd.f32 %v2064_v52, %v1208_v46  ;;  %v4423_v51 = vadd.f32 %v2064_v52, %v1219_v39  ;;  %v1909_v37 = vld [vmem:[%s4773_s4 + $0x78] sm:$0xff]  ;;  %v1908_v46 = vld [vmem:[%s4773_s4 + $0x70] sm:$0xff]  ;;  %v1907_v39 = vld [vmem:[%s4773_s4 + $0x68] sm:$0xff] }
 0x2e6   :  { %v4425_v32 = vadd.f32 %v2064_v52, %v1220_v29  ;;  %v1224_v50 = vadd.f32 %v2064_v52, %v1221_v3  ;;  %v1906_v29 = vld [vmem:[%s4773_s4 + $0x60] sm:$0xff]  ;;  %v1905_v3 = vld [vmem:[%s4773_s4 + $0x58] sm:$0xff] }
 0x2e7   :  { %v1216_v49 = vmax.f32 %v1213_v53, 0.0  ;;  %v1217_v0 = vmax.f32 %v1214_v44, 0.0  ;;  %v1218_v5 = vmax.f32 %v1215_v18, 0.0  ;;  %v1225_v6 = vmax.f32 %v4423_v51, 0.0  ;;  %v1904_v53 = vld [vmem:[%s4773_s4 + $0x50] sm:$0xff]  ;;  %v1903_v44 = vld [vmem:[%s4773_s4 + $0x48] sm:$0xff] }
 0x2e8   :  { %v1226_v24 = vmax.f32 %v4425_v32, 0.0  ;;  %v1227_v28 = vmax.f32 %v1224_v50, 0.0  ;;  %v1902_v18 = vld [vmem:[%s4773_s4 + $0x40] sm:$0xff]  ;;  %v1901_v50 = vld [vmem:[%s4773_s4 + $0x38] sm:$0xff] }
 0x2e9   :  { %1230 = vst [vmem:[#allocation3 + $0x1] sm:$0xff] %v1216_v49  ;;  %1231 = vst [vmem:[#allocation3 + $0x9] sm:$0xff] %v1217_v0  ;;  %2931 = vmatmul.mubr.f32.vlgmr.msra.gmra.mxu1 %v1216_v49 }
 0x2ea   :  { %1232 = vst [vmem:[#allocation3 + $0x11] sm:$0x1] %v1218_v5  ;;  %1236 = vst [vmem:[#allocation3 + $0x19] sm:$0xff] %v1225_v6  ;;  %2981 = vmatpush3.msra.mxu1 %v4431_v54  ;;  %2933 = vmatprep.mubr.msk.f32.mxu1 %vm3211_vm0, %v3210_v1  ;;  %v1900_v5 = vld [vmem:[%s4773_s4 + $0x30] sm:$0xff] }
 0x2eb   :  { %1237 = vst [vmem:[#allocation3 + $0x21] sm:$0xff] %v1226_v24  ;;  %1238 = vst [vmem:[#allocation3 + $0x29] sm:$0x1] %v1227_v28  ;;  %2982 = vmatprep.subr.mxu1 %v3210_v1 }
 0x2ec   :  { %2983 = vmatpush3.msra.mxu1 %v4439_v34 }
 0x2ed   :  { %2984 = vmatprep.subr.mxu1 %v3210_v1  ;;  %2934 = vmatmul.mubr.f32.gmra.mxu1 %v1217_v0 }
 0x2ee   :  { %2985 = vmatpush3.msra.mxu1 %v4450_v27  ;;  %2936 = vmatprep.mubr.msk.f32.mxu1 %vm3211_vm0, %v3210_v1 }
 0x2ef   :  { %2986 = vmatprep.subr.mxu1 %v3210_v1 }
 0x2f0   :  { %v1239_v22 = vld [vmem:[#allocation3] sm:$0xff]  ;;  %2987 = vmatpush3.msra.mxu1 %v4457_v59  ;;  %v1240_v38 = vld [vmem:[#allocation3 + $0x8] sm:$0xff] }
 0x2f1   :  { %v1260_v36 = vld [vmem:[#allocation3 + $0x11] sm:$0x1]  ;;  %2972 = vmatmul.mubr.f32.vlgmr.msra.gmra.mxu0 %v1239_v22  ;;  %2988 = vmatprep.subr.mxu1 %v3210_v1  ;;  %v1897_v22 = vld [vmem:[%s4773_s4 + $0x18] sm:$0xff] }
 0x2f2   :  { %3022 = vmatpush3.msra.mxu0 %v4166_v40  ;;  %2974 = vmatprep.mubr.msk.f32.mxu0 %vm3211_vm0, %v3210_v1  ;;  %v1241_v40 = vld [vmem:[#allocation3 + $0x10] sm:$0x1] }
 0x2f3   :  { %3023 = vmatprep.subr.mxu0 %v3210_v1  ;;  %2937 = vmatmul.mubr.f32.gmra.mxu1 %v1260_v36 }
 0x2f4   :  { %3024 = vmatpush3.msra.mxu0 %v4177_v48  ;;  %2989 = vmatpush3.msra.mxu1 %v4468_v57  ;;  %v4492_v48 = vld [vmem:[%s4772_s3 + $0x148] sm:$0xff] }
 0x2f5   :  { %3025 = vmatprep.subr.mxu0 %v3210_v1  ;;  %2975 = vmatmul.mubr.f32.gmra.mxu0 %v1240_v38  ;;  %v1896_v38 = vld [vmem:[%s4773_s4 + $0x10] sm:$0xff] }
 0x2f6   :  { %3026 = vmatpush3.msra.mxu0 %v4184_v23  ;;  %2977 = vmatprep.mubr.msk.f32.mxu0 %vm3211_vm0, %v3210_v1  ;;  %v4500_v23 = vld [vmem:[%s4772_s3 + $0x140] sm:$0xff] }
 0x2f7   :  { %3027 = vmatprep.subr.mxu0 %v3210_v1  ;;  %2990 = vmatprep.subr.mxu1 %v3210_v1 }
 0x2f8   :  { %3028 = vmatpush3.msra.mxu0 %v4191_v25  ;;  %2991 = vmatpush3.msra.mxu1 %v4480_v26  ;;  %v4509_v25 = vld [vmem:[%s4772_s3 + $0x138] sm:$0xff] }
 0x2f9   :  { %3029 = vmatprep.subr.mxu0 %v3210_v1  ;;  %2978 = vmatmul.mubr.f32.gmra.mxu0 %v1241_v40 }
 0x2fa   :  { %3030 = vmatpush3.msra.mxu0 %v4207_v33  ;;  %2992 = vmatprep.subr.mxu1 %v3210_v1  ;;  %v4518_v33 = vld [vmem:[%s4772_s3 + $0x130] sm:$0xff] }
 0x2fb   :  { %3031 = vmatprep.subr.mxu0 %v3210_v1  ;;  %2993 = vmatpush3.msra.mxu1 %v4492_v48 }
 0x2fc   :  { %3032 = vmatpush3.msra.mxu0 %v4223_v43  ;;  %2994 = vmatprep.subr.mxu1 %v3210_v1  ;;  %v4527_v43 = vld [vmem:[%s4772_s3 + $0x128] sm:$0xff] }
 0x2fd   :  { %3033 = vmatprep.subr.mxu0 %v3210_v1  ;;  %2995 = vmatpush3.msra.mxu1 %v4500_v23 }
 0x2fe   :  { %3034 = vmatpush3.msra.mxu0 %v4237_v47  ;;  %2996 = vmatprep.subr.mxu1 %v3210_v1  ;;  %v4536_v47 = vld [vmem:[%s4772_s3 + $0x120] sm:$0xff] }
 0x2ff   :  { %3035 = vmatprep.subr.mxu0 %v3210_v1  ;;  %2997 = vmatpush3.msra.mxu1 %v4509_v25 }
 0x300   :  { %3036 = vmatpush3.msra.mxu0 %v4255_v62  ;;  %2998 = vmatprep.subr.mxu1 %v3210_v1  ;;  %v4545_v62 = vld [vmem:[%s4772_s3 + $0x118] sm:$0xff] }
 0x301   :  { %3037 = vmatprep.subr.mxu0 %v3210_v1  ;;  %2999 = vmatpush3.msra.mxu1 %v4518_v33 }
 0x302   :  { %3038 = vmatpush3.msra.mxu0 %v4271_v15  ;;  %3000 = vmatprep.subr.mxu1 %v3210_v1  ;;  %v4554_v15 = vld [vmem:[%s4772_s3 + $0x110] sm:$0xff] }
 0x303   :  { %3039 = vmatprep.subr.mxu0 %v3210_v1  ;;  %3001 = vmatpush3.msra.mxu1 %v4527_v43 }
 0x304   :  { %3040 = vmatpush3.msra.mxu0 %v4287_v58  ;;  %3002 = vmatprep.subr.mxu1 %v3210_v1  ;;  %v4563_v58 = vld [vmem:[%s4772_s3 + $0x108] sm:$0xff] }
 0x305   :  { %3041 = vmatprep.subr.mxu0 %v3210_v1  ;;  %3003 = vmatpush3.msra.mxu1 %v4536_v47 }
 0x306   :  { %3042 = vmatpush3.msra.mxu0 %v4301_v7  ;;  %3004 = vmatprep.subr.mxu1 %v3210_v1  ;;  %v4572_v7 = vld [vmem:[%s4772_s3 + $0x100] sm:$0xff] }
 0x307   :  { %3043 = vmatprep.subr.mxu0 %v3210_v1  ;;  %3005 = vmatpush3.msra.mxu1 %v4545_v62 }
 0x308   :  { %3044 = vmatpush3.msra.mxu0 %v4315_v10  ;;  %3006 = vmatprep.subr.mxu1 %v3210_v1  ;;  %v1438_v10 = vld [vmem:[#allocation3 + $0x2] sm:$0xff] }
 0x309   :  { %3045 = vmatprep.subr.mxu0 %v3210_v1  ;;  %3007 = vmatpush3.msra.mxu1 %v4554_v15 }
 0x30a   :  { %3046 = vmatpush3.msra.mxu0 %v4329_v19  ;;  %3008 = vmatprep.subr.mxu1 %v3210_v1  ;;  %v1439_v19 = vld [vmem:[#allocation3 + $0xa] sm:$0xff] }
 0x30b   :  { %3047 = vmatprep.subr.mxu0 %v3210_v1  ;;  %3009 = vmatpush3.msra.mxu1 %v4563_v58 }
 0x30c   :  { %3048 = vmatpush3.msra.mxu0 %v4343_v21  ;;  %3010 = vmatprep.subr.mxu1 %v3210_v1 }
 0x30d   :  { %3049 = vmatprep.subr.mxu0 %v3210_v1  ;;  %3011 = vmatpush3.msra.mxu1 %v4572_v7 }
 0x30e   :  { %3050 = vmatpush3.msra.mxu0 %v4357_v60  ;;  %3012 = vmatprep.mubr.msk.f32.mxu1 %vm3211_vm0, %v3210_v1 }
 0x30f   :  { %3051 = vmatprep.subr.mxu0 %v3210_v1  ;;  %3053 = vmatprep.mubr.msk.f32.mxu0 %vm3211_vm0, %v3210_v1 }
 0x310   :  { %3052 = vmatpush3.msra.mxu0 %v4371_v4  ;;  %3013 = vmatmul.mubr.f32.vlgmr.msra.gmra.mxu1 %v1438_v10 }
 0x311   :  { %3054 = vmatmul.mubr.f32.vlgmr.msra.gmra.mxu0 %v1225_v6  ;;  %3062 = vmatprep.subr.mxu1 %v3210_v1  ;;  %v1899_v6 = vld [vmem:[%s4773_s4 + $0x28] sm:$0xff] }
 0x312   :  { %3103 = vmatprep.subr.mxu0 %v3210_v1  ;;  %3063 = vmatpush3.msra.mxu1 %v4201_v31  ;;  %v1440_v31 = vld [vmem:[#allocation3 + $0x12] sm:$0x1] }
 0x313   :  { %3104 = vmatpush3.msra.mxu0 %v4431_v54  ;;  %3064 = vmatprep.subr.mxu1 %v3210_v1 }
 0x314   :  { %3105 = vmatprep.subr.mxu0 %v3210_v1  ;;  %3015 = vmatprep.mubr.msk.f32.mxu1 %vm3211_vm0, %v3210_v1 }
 0x315   :  { %3056 = vmatprep.mubr.msk.f32.mxu0 %vm3211_vm0, %v3210_v1  ;;  %3065 = vmatpush3.msra.mxu1 %v4217_v41  ;;  %v1546_v41 = vld [vmem:[#allocation3 + $0x29] sm:$0x1] }
 0x316   :  { %3106 = vmatpush3.msra.mxu0 %v4439_v34  ;;  %3016 = vmatmul.mubr.f32.gmra.mxu1 %v1439_v19 }
 0x317   :  { %3057 = vmatmul.mubr.f32.gmra.mxu0 %v1226_v24  ;;  %3066 = vmatprep.subr.mxu1 %v3210_v1 }
 0x318   :  { %3107 = vmatprep.subr.mxu0 %v3210_v1  ;;  %3067 = vmatpush3.msra.mxu1 %v4231_v45  ;;  %v1541_v45 = vld [vmem:[#allocation3 + $0x18] sm:$0xff] }
 0x319   :  { %3108 = vmatpush3.msra.mxu0 %v4450_v27  ;;  %3068 = vmatprep.subr.mxu1 %v3210_v1  ;;  %v1898_v27 = vld [vmem:[%s4773_s4 + $0x20] sm:$0xff] }
 0x31a   :  { %3109 = vmatprep.subr.mxu0 %v3210_v1  ;;  %3018 = vmatprep.mubr.msk.f32.mxu1 %vm3211_vm0, %v3210_v1 }
 0x31b   :  { %3059 = vmatprep.mubr.msk.f32.mxu0 %vm3211_vm0, %v3210_v1  ;;  %3069 = vmatpush3.msra.mxu1 %v4249_v8  ;;  %v1707_v8 = vld [vmem:[#allocation3 + $0x1a] sm:$0xff] }
 0x31c   :  { %3110 = vmatpush3.msra.mxu0 %v4457_v59  ;;  %3019 = vmatmul.mubr.f32.gmra.mxu1 %v1440_v31 }
 0x31d   :  { %3060 = vmatmul.mubr.f32.gmra.mxu0 %v1546_v41  ;;  %3070 = vmatprep.subr.mxu1 %v3210_v1 }
 0x31e   :  { %3111 = vmatprep.subr.mxu0 %v3210_v1  ;;  %3071 = vmatpush3.msra.mxu1 %v4265_v14  ;;  %v1542_v14 = vld [vmem:[#allocation3 + $0x20] sm:$0xff] }
 0x31f   :  { %3112 = vmatpush3.msra.mxu0 %v4468_v57  ;;  %3072 = vmatprep.subr.mxu1 %v3210_v1 }
 0x320   :  { %3113 = vmatprep.subr.mxu0 %v3210_v1  ;;  %3073 = vmatpush3.msra.mxu1 %v4281_v56  ;;  %v1708_v56 = vld [vmem:[#allocation3 + $0x22] sm:$0xff] }
 0x321   :  { %3114 = vmatpush3.msra.mxu0 %v4480_v26  ;;  %3074 = vmatprep.subr.mxu1 %v3210_v1  ;;  %v1895_v26 = vld [vmem:[%s4773_s4 + $0x8] sm:$0xff] }
 0x322   :  { %3115 = vmatprep.subr.mxu0 %v3210_v1  ;;  %3075 = vmatpush3.msra.mxu1 %v4295_v2  ;;  %v1709_v2 = vld [vmem:[#allocation3 + $0x2a] sm:$0x1] }
 0x323   :  { %3116 = vmatpush3.msra.mxu0 %v4492_v48  ;;  %3076 = vmatprep.subr.mxu1 %v3210_v1 }
 0x324   :  { %3117 = vmatprep.subr.mxu0 %v3210_v1  ;;  %3077 = vmatpush3.msra.mxu1 %v4309_v9  ;;  %v1543_v9 = vld [vmem:[#allocation3 + $0x28] sm:$0x1] }
 0x325   :  { %3118 = vmatpush3.msra.mxu0 %v4500_v23  ;;  %3078 = vmatprep.subr.mxu1 %v3210_v1 }
 0x326   :  { %3119 = vmatprep.subr.mxu0 %v3210_v1  ;;  %3079 = vmatpush3.msra.mxu1 %v4323_v11 }
 0x327   :  { %3120 = vmatpush3.msra.mxu0 %v4509_v25  ;;  %3080 = vmatprep.subr.mxu1 %v3210_v1  ;;  %v1894_v25 = vld [vmem:[%s4773_s4] sm:$0xff] }
 0x328   :  { %3121 = vmatprep.subr.mxu0 %v3210_v1  ;;  %3081 = vmatpush3.msra.mxu1 %v4337_v20 }
 0x329   :  { %3122 = vmatpush3.msra.mxu0 %v4518_v33  ;;  %3082 = vmatprep.subr.mxu1 %v3210_v1 }
 0x32a   :  { %3123 = vmatprep.subr.mxu0 %v3210_v1  ;;  %3083 = vmatpush3.msra.mxu1 %v4351_v55 }
 0x32b   :  { %3124 = vmatpush3.msra.mxu0 %v4527_v43  ;;  %3084 = vmatprep.subr.mxu1 %v3210_v1 }
 0x32c   :  { %3125 = vmatprep.subr.mxu0 %v3210_v1  ;;  %3085 = vmatpush3.msra.mxu1 %v4365_v63 }
 0x32d   :  { %3126 = vmatpush3.msra.mxu0 %v4536_v47  ;;  %3086 = vmatprep.subr.mxu1 %v3210_v1 }
 0x32e   :  { %3127 = vmatprep.subr.mxu0 %v3210_v1  ;;  %3087 = vmatpush3.msra.mxu1 %v4379_v16 }
 0x32f   :  { %3128 = vmatpush3.msra.mxu0 %v4545_v62  ;;  %3088 = vmatprep.subr.mxu1 %v3210_v1 }
 0x330   :  { %3129 = vmatprep.subr.mxu0 %v3210_v1  ;;  %3089 = vmatpush3.msra.mxu1 %v4386_v17 }
 0x331   :  { %3130 = vmatpush3.msra.mxu0 %v4554_v15  ;;  %3090 = vmatprep.subr.mxu1 %v3210_v1 }
 0x332   :  { %3131 = vmatprep.subr.mxu0 %v3210_v1  ;;  %3091 = vmatpush3.msra.mxu1 %v4392_v61 }
 0x333   :  { %3132 = vmatpush3.msra.mxu0 %v4563_v58  ;;  %3092 = vmatprep.subr.mxu1 %v3210_v1 }
 0x334   :  { %3133 = vmatprep.subr.mxu0 %v3210_v1  ;;  %3093 = vmatpush3.msra.mxu1 %v4399_v12 }
 0x335   :  { %3094 = vmatprep.mubr.msk.f32.mxu1 %vm3211_vm0, %v3210_v1  ;;  %3134 = vmatpush3.msra.mxu0 %v4572_v7 }
 0x336   :  { %3135 = vmatprep.mubr.msk.f32.mxu0 %vm3211_vm0, %v3210_v1  ;;  %3095 = vmatmul.mubr.f32.vlgmr.msra.gmra.mxu1 %v1541_v45 }
 0x337   :  { %3136 = vmatmul.mubr.f32.vlgmr.msra.gmra.mxu0 %v1707_v8  ;;  %3097 = vmatprep.mubr.msk.f32.mxu1 %vm3211_vm0, %v3210_v1 }
 0x338   :  { %3138 = vmatprep.mubr.msk.f32.mxu0 %vm3211_vm0, %v3210_v1  ;;  %3144 = vmatprep.subr.mxu1 %v3210_v1 }
 0x339   :  { %3145 = vmatpush3.msra.mxu1 %v1909_v37 }
 0x33a   :  { %3098 = vmatmul.mubr.f32.gmra.mxu1 %v1542_v14  ;;  %3146 = vmatprep.subr.mxu1 %v3210_v1 }
 0x33b   :  { %3139 = vmatmul.mubr.f32.gmra.mxu0 %v1708_v56  ;;  %3100 = vmatprep.mubr.msk.f32.mxu1 %vm3211_vm0, %v3210_v1 }
 0x33c   :  { %3141 = vmatprep.mubr.msk.f32.mxu0 %vm3211_vm0, %v3210_v1  ;;  %3147 = vmatpush3.msra.mxu1 %v1908_v46 }
 0x33d   :  { %3148 = vmatprep.subr.mxu1 %v3210_v1 }
 0x33e   :  { %3101 = vmatmul.mubr.f32.gmra.mxu1 %v1543_v9 }
 0x33f   :  { %3142 = vmatmul.mubr.f32.gmra.mxu0 %v1709_v2  ;;  %3176 = vmatprep.mubr.msk.f32.mxu1 %vm3211_vm0, %v3210_v1 }
 0x340   :  { %3149 = vmatpush3.msra.mxu1 %v1907_v39 }
 0x341   :  { %3150 = vmatprep.subr.mxu1 %v3210_v1 }
 0x342   :  { %3151 = vmatpush3.msra.mxu1 %v1906_v29 }
 0x343   :  { %3152 = vmatprep.subr.mxu1 %v3210_v1 }
 0x344   :  { %3153 = vmatpush3.msra.mxu1 %v1905_v3 }
 0x345   :  { %3154 = vmatprep.subr.mxu1 %v3210_v1 }
 0x346   :  { %3155 = vmatpush3.msra.mxu1 %v1904_v53 }
 0x347   :  { %3156 = vmatprep.subr.mxu1 %v3210_v1 }
 0x348   :  { %3157 = vmatpush3.msra.mxu1 %v1903_v44 }
 0x349   :  { %3158 = vmatprep.subr.mxu1 %v3210_v1 }
 0x34a   :  { %3159 = vmatpush3.msra.mxu1 %v1902_v18 }
 0x34b   :  { %3160 = vmatprep.subr.mxu1 %v3210_v1 }
 0x34c   :  { %3161 = vmatpush3.msra.mxu1 %v1901_v50 }
 0x34d   :  { %3162 = vmatprep.subr.mxu1 %v3210_v1 }
 0x34e   :  { %3163 = vmatpush3.msra.mxu1 %v1900_v5 }
 0x34f   :  { %3164 = vmatprep.subr.mxu1 %v3210_v1 }
 0x350   :  { %3165 = vmatpush3.msra.mxu1 %v1899_v6 }
 0x351   :  { %3166 = vmatprep.subr.mxu1 %v3210_v1 }
 0x352   :  { %3167 = vmatpush3.msra.mxu1 %v1898_v27 }
 0x353   :  { %3168 = vmatprep.subr.mxu1 %v3210_v1 }
 0x354   :  { %3169 = vmatpush3.msra.mxu1 %v1897_v22 }
 0x355   :  { %3170 = vmatprep.subr.mxu1 %v3210_v1 }
 0x356   :  { %3171 = vmatpush3.msra.mxu1 %v1896_v38 }
 0x357   :  { %3172 = vmatprep.subr.mxu1 %v3210_v1 }
 0x358   :  { %3173 = vmatpush3.msra.mxu1 %v1895_v26 }
 0x359   :  { %3174 = vmatprep.subr.mxu1 %v3210_v1 }
 0x35a   :  { %3175 = vmatpush3.msra.mxu1 %v1894_v25 }
 0x3a9   :  { %v1344_v11 = vpop.f32.mrf.mxu1 }
 0x3ab   :  { %v2932_v20 = vpop.f32.mrf.mxu1 }
 0x3ad   :  { %v1349_v21 = vpop.f32.mrf.mxu1 }
 0x3af   :  { %v2935_v55 = vpop.f32.mrf.mxu1 }
 0x3b1   :  { %v1424_v60 = vpop.f32.mrf.mxu0 }
 0x3b2   :  { %v1425_v63 = vadd.f32 %v1424_v60, %v1344_v11 }
 0x3b3   :  { %v2973_v4 = vpop.f32.mrf.mxu0  ;;  %v1354_v16 = vpop.f32.mrf.mxu1 }
 0x3b5   :  { %v1429_v17 = vpop.f32.mrf.mxu0  ;;  %v2938_v61 = vpop.f32.mrf.mxu1 }
 0x3b6   :  { %v1430_v12 = vadd.f32 %v1429_v17, %v1349_v21 }
 0x3b7   :  { %v2976_v42 = vpop.f32.mrf.mxu0 }
 0x3b9   :  { %v1434_v13 = vpop.f32.mrf.mxu0 }
 0x3ba   :  { %v1435_v52 = vadd.f32 %v1434_v13, %v1354_v16 }
 0x3bb   :  { %v2979_v35 = vpop.f32.mrf.mxu0 }
 0x3d0   :  { %v1524_v51 = vpop.f32.mrf.mxu1 }
 0x3d1   :  { %v1613_v32 = vpop.f32.mrf.mxu0  ;;  %v4721_v24 = vadd.f32 %v1524_v51, %v1425_v63 }
 0x3d2   :  { %v3014_v49 = vpop.f32.mrf.mxu1 }
 0x3d3   :  { %v3055_v0 = vpop.f32.mrf.mxu0 }
 0x3d6   :  { %v1529_v54 = vpop.f32.mrf.mxu1 }
 0x3d7   :  { %v4723_v28 = vadd.f32 %v1529_v54, %v1430_v12  ;;  %v1618_v34 = vpop.f32.mrf.mxu0 }
 0x3d8   :  { %v3017_v59 = vpop.f32.mrf.mxu1 }
 0x3d9   :  { %v1793_v36 = vadd.f32 %v4723_v28, %v4721_v24  ;;  %v3058_v57 = vpop.f32.mrf.mxu0 }
 0x3dc   :  { %v1534_v40 = vpop.f32.mrf.mxu1 }
 0x3dd   :  { %v1540_v48 = vadd.f32 %v1534_v40, %v1435_v52  ;;  %v1623_v23 = vpop.f32.mrf.mxu0 }
 0x3de   :  { %v3020_v33 = vpop.f32.mrf.mxu1 }
 0x3df   :  { %v1794_v43 = vsel %vm1147_vm2, %v1540_v48, 0.0  ;;  %v3061_v47 = vpop.f32.mrf.mxu0 }
 0x3e0   :  { %v1795_v62 = vadd.f32 %v1794_v43, %v1793_v36 }
 0x3e2   :  { %v1796_v41 = vrot.slane %v1795_v62, 4 }
 0x3e4   :  { %v1797_v21 = vadd.f32 %v1796_v41, %v1795_v62 }
 0x3e6   :  { %v1798_v17 = vrot.slane %v1797_v21, 2 }
 0x3e8   :  { %v1799_v42 = vadd.f32 %v1798_v17, %v1797_v21 }
 0x3ea   :  { %v1800_v35 = vrot.slane %v1799_v42, 1 }
 0x3ec   :  { %v1801_v39 = vadd.f32 %v1800_v35, %v1799_v42 }
 0x3f6   :  { %v1693_v15 = vpop.f32.mrf.mxu1 }
 0x3f7   :  { %v1776_v58 = vpop.f32.mrf.mxu0  ;;  %v1694_v56 = vadd.f32 %v1693_v15, %v1613_v32 }
 0x3f8   :  { %v3096_v7 = vpop.f32.mrf.mxu1 }
 0x3f9   :  { %v3137_v10 = vpop.f32.mrf.mxu0  ;;  %v1790_v55 = vadd.f32 %v1776_v58, %v1694_v56 }
 0x3fa   :  { %v1698_v19 = vpop.f32.mrf.mxu1 }
 0x3fb   :  { %v1781_v31 = vpop.f32.mrf.mxu0  ;;  %v1699_v45 = vadd.f32 %v1698_v19, %v1618_v34 }
 0x3fc   :  { %v3099_v8 = vpop.f32.mrf.mxu1 }
 0x3fd   :  { %v3140_v14 = vpop.f32.mrf.mxu0  ;;  %v1791_v2 = vadd.f32 %v1781_v31, %v1699_v45  ;;  %v28_v31 = vld [vmem:[%s4774_s5 + $0x4] sm:$0x1] }
 0x3fe   :  { %v1703_v9 = vpop.f32.mrf.mxu1  ;;  %v2097_v14 = vld [vmem:[%s4774_s5 + $0x5] ss:$0 sm:$0xff] }
 0x3ff   :  { %v1704_v11 = vadd.f32 %v1703_v9, %v1623_v23  ;;  %v1786_v20 = vpop.f32.mrf.mxu0  ;;  %v1802_v4 = vadd.f32 %v1791_v2, %v1790_v55 }
 0x400   :  { %v3102_v1 = vpop.f32.mrf.mxu1 }
 0x401   :  { %v1792_v60 = vadd.f32 %v1786_v20, %v1704_v11  ;;  %v3143_v63 = vpop.f32.mrf.mxu0 }
 0x403   :  { %v1803_v16 = vsel %vm1147_vm2, %v1792_v60, 0.0 }
 0x404   :  { %v1804_v61 = vadd.f32 %v1803_v16, %v1802_v4 }
 0x406   :  { %v1805_v12 = vrot.slane %v1804_v61, 4 }
 0x408   :  { %v1806_v13 = vadd.f32 %v1805_v12, %v1804_v61 }
 0x40a   :  { %v1807_v52 = vrot.slane %v1806_v13, 2 }
 0x40c   :  { %v1808_v37 = vadd.f32 %v1807_v52, %v1806_v13 }
 0x40e   :  { %v1809_v46 = vrot.slane %v1808_v37, 1 }
 0x410   :  { %v1810_v29 = vadd.f32 %v1809_v46, %v1808_v37 }
 0x412   :  { %v1811_v3 = vadd.f32 %v1810_v29, %v1801_v39 }
 0x414   :  { %v1812_v53 = vmul.f32 0.029411765, %v1811_v3 }
 0x416   :  { %v1813_v44 = vsub.f32 %v4721_v24, %v1812_v53  ;;  %v1814_v18 = vsub.f32 %v4723_v28, %v1812_v53  ;;  %v1815_v51 = vsub.f32 %v1540_v48, %v1812_v53  ;;  %v1816_v32 = vsub.f32 %v1790_v55, %v1812_v53 }
 0x417   :  { %v1817_v50 = vsub.f32 %v1791_v2, %v1812_v53  ;;  %v1818_v49 = vsub.f32 %v1792_v60, %v1812_v53 }
 0x418   :  { %v1819_v0 = vmul.f32 %v1813_v44, %v1813_v44  ;;  %v1820_v5 = vmul.f32 %v1814_v18, %v1814_v18  ;;  %v1821_v6 = vmul.f32 %v1815_v51, %v1815_v51  ;;  %v1831_v54 = vmul.f32 %v1816_v32, %v1816_v32 }
 0x419   :  { %v1832_v34 = vmul.f32 %v1817_v50, %v1817_v50  ;;  %v1833_v27 = vmul.f32 %v1818_v49, %v1818_v49 }
 0x41a   :  { %v1822_v59 = vadd.f32 %v1820_v5, %v1819_v0  ;;  %v1823_v22 = vsel %vm1147_vm2, %v1821_v6, 0.0 }
 0x41b   :  { %v1834_v36 = vadd.f32 %v1832_v34, %v1831_v54  ;;  %v1835_v57 = vsel %vm1147_vm2, %v1833_v27, 0.0 }
 0x41c   :  { %v1824_v38 = vadd.f32 %v1823_v22, %v1822_v59  ;;  %v2098_v59 = vld [vmem:[%s4774_s5 + $0x6] ss:$0 sm:$0xff] }
 0x41d   :  { %v1836_v24 = vadd.f32 %v1835_v57, %v1834_v36 }
 0x41e   :  { %v1825_v26 = vrot.slane %v1824_v38, 4 }
 0x41f   :  { %v1837_v28 = vrot.slane %v1836_v24, 4 }
 0x420   :  { %v1826_v40 = vadd.f32 %v1825_v26, %v1824_v38 }
 0x421   :  { %v1838_v48 = vadd.f32 %v1837_v28, %v1836_v24 }
 0x422   :  { %v1827_v23 = vrot.slane %v1826_v40, 2 }
 0x423   :  { %v1839_v25 = vrot.slane %v1838_v48, 2 }
 0x424   :  { %v1828_v33 = vadd.f32 %v1827_v23, %v1826_v40 }
 0x425   :  { %v1840_v43 = vadd.f32 %v1839_v25, %v1838_v48 }
 0x426   :  { %v1829_v47 = vrot.slane %v1828_v33, 1 }
 0x427   :  { %v1841_v62 = vrot.slane %v1840_v43, 1 }
 0x428   :  { %v1830_v15 = vadd.f32 %v1829_v47, %v1828_v33 }
 0x429   :  { %v1842_v58 = vadd.f32 %v1841_v62, %v1840_v43 }
 0x42b   :  { %v1843_v7 = vadd.f32 %v1842_v58, %v1830_v15 }
 0x42d   :  { %v1844_v10 = vmul.f32 0.029411765, %v1843_v7 }
 0x42f   :  { %v1845_v19 = vadd.f32 1e-05, %v1844_v10 }
 0x431   :  { %3186 = vrsqrt.f32 %v1845_v19 }
 0x43e   :  { %v3187_v41 = vpop.eup %3186 }
 0x43f   :  { %v1847_v45 = vmul.f32 %v3187_v41, %v28_v31 }
 0x441   :  { %v1851_v8 = vrot.slane %v1847_v45, %v4809_v30 }
 0x443   :  { %v1852_v56 = vmul.f32 %v1851_v8, %v1813_v44  ;;  %v1853_v2 = vmul.f32 %v1851_v8, %v1814_v18  ;;  %v1854_v9 = vmul.f32 %v1851_v8, %v1815_v51  ;;  %v1865_v11 = vmul.f32 %v1851_v8, %v1816_v32 }
 0x444   :  { %v1866_v20 = vmul.f32 %v1851_v8, %v1817_v50  ;;  %v1867_v21 = vmul.f32 %v1851_v8, %v1818_v49 }
 0x445   :  { %v1859_v55 = vadd.f32 %v2097_v14, %v1852_v56  ;;  %v1860_v1 = vadd.f32 %v2097_v14, %v1853_v2  ;;  %v1861_v60 = vadd.f32 %v2097_v14, %v1854_v9  ;;  %v1868_v63 = vadd.f32 %v2097_v14, %v1865_v11 }
 0x446   :  { %v1869_v4 = vadd.f32 %v2097_v14, %v1866_v20  ;;  %v1870_v16 = vadd.f32 %v2097_v14, %v1867_v21 }
 0x447   :  { %v1862_v17 = vmax.f32 %v1859_v55, 0.0  ;;  %v1863_v61 = vmax.f32 %v1860_v1, 0.0  ;;  %v1864_v12 = vmax.f32 %v1861_v60, 0.0  ;;  %v1871_v30 = vmax.f32 %v1868_v63, 0.0 }
 0x448   :  { %v1872_v42 = vmax.f32 %v1869_v4, 0.0  ;;  %v1873_v13 = vmax.f32 %v1870_v16, 0.0 }
 0x449   :  { %v1874_v52 = vadd.f32 %v1863_v61, %v1862_v17  ;;  %v1875_v35 = vsel %vm1147_vm2, %v1864_v12, 0.0 }
 0x44a   :  { %v1883_v37 = vadd.f32 %v1872_v42, %v1871_v30  ;;  %v1884_v46 = vsel %vm1147_vm2, %v1873_v13, 0.0 }
 0x44b   :  { %v1876_v39 = vadd.f32 %v1875_v35, %v1874_v52 }
 0x44c   :  { %v1885_v29 = vadd.f32 %v1884_v46, %v1883_v37 }
 0x44d   :  { %v1877_v3 = vrot.slane %v1876_v39, 4 }
 0x44e   :  { %v1886_v53 = vrot.slane %v1885_v29, 4 }
 0x44f   :  { %v1878_v44 = vadd.f32 %v1877_v3, %v1876_v39 }
 0x450   :  { %v1887_v18 = vadd.f32 %v1886_v53, %v1885_v29 }
 0x451   :  { %v1879_v51 = vrot.slane %v1878_v44, 2 }
 0x452   :  { %v1888_v32 = vrot.slane %v1887_v18, 2 }
 0x453   :  { %v1880_v50 = vadd.f32 %v1879_v51, %v1878_v44 }
 0x454   :  { %v1889_v49 = vadd.f32 %v1888_v32, %v1887_v18 }
 0x455   :  { %v1881_v0 = vrot.slane %v1880_v50, 1 }
 0x456   :  { %v1890_v5 = vrot.slane %v1889_v49, 1 }
 0x457   :  { %v1882_v6 = vadd.f32 %v1881_v0, %v1880_v50 }
 0x458   :  { %v1891_v54 = vadd.f32 %v1890_v5, %v1889_v49 }
 0x45a   :  { %v1892_v34 = vsel %vm1147_vm2, %v1882_v6, %v1891_v54 }
 0x45b   :  { %v1893_v27 = vmul.f32 0.05882353, %v1892_v34 }
 0x45d   :  { %3177 = vmatmul.mubr.f32.vlgmr.msra.gmra.mxu1 %v1893_v27 }
 0x51d   :  { %v1980_v22 = vpop.f32.mrf.mxu1 }
 0x51e   :  { %v1981_v36 = vadd.f32 %v2098_v59, %v1980_v22 }
 0x51f   :  { %v3178_v57 = vpop.f32.mrf.mxu1 }
 0x520   :  { %1984 = vst [vmem:[#allocation4] sm:$0x3] %v1981_v36 }
 0x521   :  { %3199 = shalt.err (!%p3196_p4)
}
 0x522   :  { %1994 = dma.vmem_to_hbm [thread:$0]  %s1992_s21, 32, %s4775_s6, [#allocation5]  }
 0x523   :  { %3208 = dma.done.wait [#allocation5], 32  }
 0x524   :  { %3209 = vsyncadd [#allocation5], 4294967264 }
 0x525   :  { %1998 = vsyncpa [#allocation5], 1 }

</bundles_post_ra>
